<compile_context>
chip_gen: v7x
topology: tpu7x:2x2x1
jax: 0.10.0
libtpu: 0.0.40
codegen_flags: <defaults>
</compile_context>

<pallas_src>
import functools

import jax
import jax.numpy as jnp
from jax import lax
from jax.experimental import pallas as pl
from jax.experimental.pallas import tpu as pltpu


def _rot_down(x, k):
    """out[..., j] = x[..., j + k] (wrap-around) — lane rotation via slice+concat."""
    return jnp.concatenate([x[..., k:], x[..., :k]], axis=-1)


# ----------------------------------------------------------------------------
# Fused kernel: hoisted input projection + bidirectional masked GRU recurrence
# (state in the loop carry) + output combine + CA_NET epilogue.
# Gate lane layout inside each Hp=128 slab:  n:[0,H)  r:[H,2H)  z:[2H,3H)  pad.
# ----------------------------------------------------------------------------
def text_encoder_kernel(H,
                        emb_ref,    # (T, 2B, Hp)  fwd rows | time-reversed bwd rows
                        mask_ref,   # (T, 2B, 1)   validity mask (un-broadcast)
                        wih_ref,    # (Hp, 2Hp)    packed W_ih^T: cols [0,Hp)=fwd, [Hp,2Hp)=bwd
                        whh_ref,    # (2Hp, Hp)    packed W_hh^T: rows [0,Hp)=fwd, [Hp,2Hp)=bwd
                        bias_ref,   # (2, Hp)      folded biases per direction (r,z: bih+bhh ; n: bih)
                        bhhn_ref,   # (2, Hp)      n-gate recurrent bias per direction
                        wca_ref,    # (Hp, 2Hp)    CA_NET fc weight^T (mu | logvar blocks)
                        bca_ref,    # (1, 2Hp)
                        eps_ref,    # (B, Hp)
                        out_ref,    # (T, B, Hp)
                        hid_ref,    # (2, B, Hp)
                        c_ref, mu_ref, lv_ref,      # (B, Hp) each
                        gx_scr,     # (T, 2B, Hp)  hoisted input projections
                        oall_scr):  # (T, 2B, Hp)  per-step masked outputs (both dirs)
    T = out_ref.shape[0]
    B = out_ref.shape[1]
    Hp = out_ref.shape[2]
    f32 = jnp.float32

    # ---- hoisted input projection: ONE matmul for both directions ------------
    emb_flat = emb_ref[...].reshape(T * 2 * B, Hp)
    gx_all = jnp.dot(emb_flat, wih_ref[...], preferred_element_type=f32)   # (T*2B, 2Hp)
    gx_all = gx_all.reshape(T, 2 * B, 2 * Hp)

    rows = lax.broadcasted_iota(jnp.int32, (2 * B, Hp), 0)
    is_fwd = rows < B                                                      # (2B, Hp)
    bias_rows = jnp.where(is_fwd, bias_ref[0:1, :], bias_ref[1:2, :])      # sublane bcast
    bhhn_rows = jnp.where(is_fwd, bhhn_ref[0:1, :], bhhn_ref[1:2, :])
    fmask = is_fwd.astype(f32)
    bmask = 1.0 - fmask

    gx_scr[...] = (jnp.where(is_fwd[None], gx_all[:, :, :Hp], gx_all[:, :, Hp:])
                   + bias_rows[None])

    # ---- bidirectional GRU recurrence; state kept in the fori_loop carry -----
    # State layout hcat (2B, 2Hp): fwd rows hold h in lanes [0,H) of the LEFT Hp
    # block, bwd rows hold h in lanes [0,H) of the RIGHT Hp block, so one fused
    # (2B,2Hp)x(2Hp,Hp) matmul drives both directions.
    # TODO(synk): hold W_hh stationary in the MXU across steps
    # (pltpu.matmul_push_rhs/_acc_lhs/_pop) and add a T-chunk pipeline for long
    # sequences; not applied here to keep the kernel robust at test sizes.
    def step(i, hcat):                                    # hcat: (2B, 2Hp)
        gx = gx_scr[i]                                    # (2B, Hp)
        gh = jnp.dot(hcat, whh_ref[...], preferred_element_type=f32)   # (2B, Hp)
        rz = jax.nn.sigmoid(gx + gh)                      # r at [H,2H), z at [2H,3H)
        r_al = _rot_down(rz, H)                           # r -> lanes [0,H)
        z_al = _rot_down(rz, 2 * H)                       # z -> lanes [0,H)
        n = jnp.tanh(gx + r_al * (gh + bhhn_rows))        # n at lanes [0,H)
        hprev = hcat[:, :Hp] + hcat[:, Hp:]               # h at lanes [0,H)
        hnew = n + z_al * (hprev - n)                     # (1-z)*n + z*hprev
        m = mask_ref[i]                                   # (2B, 1) -> lane bcast
        oall_scr[i] = m * hnew                            # one full-vreg store
        hsel = hprev + m * (hnew - hprev)                 # packed-seq freeze
        return jnp.concatenate([hsel * fmask, hsel * bmask], axis=-1)

    hcat = lax.fori_loop(0, T, step, jnp.zeros((2 * B, 2 * Hp), f32),
                         unroll=True)

    # ---- combine fwd + time-reversed bwd output contributions (epilogue) -----
    for t in range(T):
        a = oall_scr[t]                                   # fwd contribs @ time t
        b = oall_scr[T - 1 - t]                           # bwd contribs @ time t
        out_ref[t] = a[:B] + b[B:]

    hf = hcat[:B, :Hp]
    hb = hcat[B:, Hp:]
    hid_ref[0] = hf
    hid_ref[1] = hb

    # ---- CA_NET fused epilogue: Linear -> LeakyReLU -> reparameterize --------
    x = jnp.dot(hf, wca_ref[...], preferred_element_type=f32) + bca_ref[...]
    x = jnp.where(x >= 0.0, x, 0.01 * x)                  # nn.LeakyReLU() slope
    mu = x[:, :Hp]
    lv = x[:, Hp:]
    mu_ref[...] = mu
    lv_ref[...] = lv
    c_ref[...] = eps_ref[...] * jnp.exp(0.5 * lv) + mu    # eps.mul(std).add_(mu)


# ----------------------------------------------------------------------------
# Parameter packing: PyTorch-layout raw params -> padded / packed kernel params.
# Packed gate block order inside one Hp slab: (n, r, z)  <- torch order (r, z, n).
# ----------------------------------------------------------------------------
_GATE_PERM = (2, 0, 1)   # packed block g takes torch gate _GATE_PERM[g]


def _round_up(x, m):
    return ((x + m - 1) // m) * m


def _pack_gru_weight_t(w, H, Hp):
    """w: (3H, H) torch layout -> (Hp, Hp) transposed, gates packed (n|r|z)."""
    wt = w.T.astype(jnp.float32)                 # (H, 3H), torch gate order r,z,n
    out = jnp.zeros((Hp, Hp), jnp.float32)
    for g, tg in enumerate(_GATE_PERM):
        out = out.at[:H, g * H:(g + 1) * H].set(wt[:, tg * H:(tg + 1) * H])
    return out


def _pack_gru_bias(b, H, Hp):
    out = jnp.zeros((Hp,), jnp.float32)
    for g, tg in enumerate(_GATE_PERM):
        out = out.at[g * H:(g + 1) * H].set(b[tg * H:(tg + 1) * H].astype(jnp.float32))
    return out


def _pad_blocks_t(w, H, Hp, n_blocks):
    """(n_blocks*H, H) -> (Hp, n_blocks*Hp) transposed, each block 128-aligned."""
    wt = w.T.astype(jnp.float32)
    out = jnp.zeros((Hp, n_blocks * Hp), jnp.float32)
    for g in range(n_blocks):
        out = out.at[:H, g * Hp:g * Hp + H].set(wt[:, g * H:(g + 1) * H])
    return out


def _pad_blocks_bias(b, H, Hp, n_blocks):
    out = jnp.zeros((n_blocks * Hp,), jnp.float32)
    for g in range(n_blocks):
        out = out.at[g * Hp:g * Hp + H].set(b[g * H:(g + 1) * H].astype(jnp.float32))
    return out


def pack_params(raw, H):
    Hp = _round_up(3 * H, 128)          # all three gates fit one lane slab
    V = raw["emb"].shape[0]

    emb = jnp.zeros((V, Hp), jnp.float32).at[:, :H].set(raw["emb"].astype(jnp.float32))

    wih = jnp.concatenate([_pack_gru_weight_t(raw["w_ih_f"], H, Hp),
                           _pack_gru_weight_t(raw["w_ih_b"], H, Hp)], axis=1)  # (Hp, 2Hp)
    whh = jnp.concatenate([_pack_gru_weight_t(raw["w_hh_f"], H, Hp),
                           _pack_gru_weight_t(raw["w_hh_b"], H, Hp)], axis=0)  # (2Hp, Hp)

    def fold(bih, bhh):
        bi = _pack_gru_bias(bih, H, Hp)
        bh = _pack_gru_bias(bhh, H, Hp)
        bias = bi.at[H:3 * H].add(bh[H:3 * H])                    # fold b_hh into r,z
        bhhn = jnp.zeros((Hp,), jnp.float32).at[:H].set(bh[:H])   # n-gate recurrent bias
        return bias, bhhn

    bias_f, bhhn_f = fold(raw["b_ih_f"], raw["b_hh_f"])
    bias_b, bhhn_b = fold(raw["b_ih_b"], raw["b_hh_b"])

    return dict(
        emb=emb,
        wih=wih,
        whh=whh,
        bias2=jnp.stack([bias_f, bias_b], axis=0),                # (2, Hp)
        bhhn2=jnp.stack([bhhn_f, bhhn_b], axis=0),                # (2, Hp)
        wca=_pad_blocks_t(raw["w_ca"], H, Hp, 2),                 # (Hp, 2Hp)
        bca=_pad_blocks_bias(raw["b_ca"], H, Hp, 2)[None, :],     # (1, 2Hp)
    )


# ----------------------------------------------------------------------------
# Wrapper: embedding lookup, compact inputs, pallas_call, strip lane padding.
# ----------------------------------------------------------------------------
def text_encoder_forward(pp, input_seqs, input_lengths, eps):
    T, B = input_seqs.shape
    Hp = pp["emb"].shape[1]
    H = eps.shape[1]
    f32 = jnp.float32

    embedded = jnp.take(pp["emb"], input_seqs, axis=0)               # (T, B, Hp)
    emb2 = jnp.concatenate([embedded, embedded[::-1]], axis=1)       # (T, 2B, Hp)

    mask = (jnp.arange(T, dtype=jnp.int32)[:, None]
            < input_lengths[None, :]).astype(f32)                    # (T, B)
    mask2 = jnp.concatenate([mask, mask[::-1]], axis=1)[:, :, None]  # (T, 2B, 1)

    eps_pad = jnp.zeros((B, Hp), f32).at[:, :H].set(eps)

    vmem = pl.BlockSpec(memory_space=pltpu.MemorySpace.VMEM)
    kern = functools.partial(text_encoder_kernel, H)

    out_p, hid_p, c_p, mu_p, lv_p = pl.pallas_call(
        kern,
        out_shape=(jax.ShapeDtypeStruct((T, B, Hp), f32),
                   jax.ShapeDtypeStruct((2, B, Hp), f32),
                   jax.ShapeDtypeStruct((B, Hp), f32),
                   jax.ShapeDtypeStruct((B, Hp), f32),
                   jax.ShapeDtypeStruct((B, Hp), f32)),
        in_specs=[vmem] * 9,
        out_specs=(vmem,) * 5,
        scratch_shapes=[pltpu.VMEM((T, 2 * B, Hp), f32),             # hoisted gx
                        pltpu.VMEM((T, 2 * B, Hp), f32)],            # per-step outputs
    )(emb2, mask2, pp["wih"], pp["whh"], pp["bias2"], pp["bhhn2"],
      pp["wca"], pp["bca"], eps_pad)

    # strip lane padding (glue)
    return (out_p[:, :, :H], hid_p[:, :, :H],
            c_p[:, :H], mu_p[:, :H], lv_p[:, :H])


# ----------------------------------------------------------------------------
# Pure-JAX reference using the RAW (unpadded, PyTorch-layout) parameters.
# ----------------------------------------------------------------------------
def reference_forward(raw, input_seqs, input_lengths, eps):
    T, B = input_seqs.shape
    H = raw["emb"].shape[1]
    emb = raw["emb"][input_seqs]
    mask = (jnp.arange(T)[:, None] < input_lengths[None, :]).astype(jnp.float32)[:, :, None]

    def cell(x, h, w_ih, w_hh, b_ih, b_hh):
        gx = x @ w_ih.T + b_ih
        gh = h @ w_hh.T + b_hh
        r = jax.nn.sigmoid(gx[:, :H] + gh[:, :H])
        z = jax.nn.sigmoid(gx[:, H:2 * H] + gh[:, H:2 * H])
        n = jnp.tanh(gx[:, 2 * H:] + r * gh[:, 2 * H:])
        return (1.0 - z) * n + z * h

    hf = jnp.zeros((B, H), jnp.float32)
    hb = jnp.zeros((B, H), jnp.float32)
    out_f, out_b = [], [None] * T
    for t in range(T):
        hn = cell(emb[t], hf, raw["w_ih_f"], raw["w_hh_f"], raw["b_ih_f"], raw["b_hh_f"])
        hf = mask[t] * hn + (1.0 - mask[t]) * hf
        out_f.append(mask[t] * hn)
    for t in range(T - 1, -1, -1):
        hn = cell(emb[t], hb, raw["w_ih_b"], raw["w_hh_b"], raw["b_ih_b"], raw["b_hh_b"])
        hb = mask[t] * hn + (1.0 - mask[t]) * hb
        out_b[t] = mask[t] * hn
    outputs = jnp.stack([a + b for a, b in zip(out_f, out_b)], axis=0)
    hidden = jnp.stack([hf, hb], axis=0)

    x = hidden[0] @ raw["w_ca"].T + raw["b_ca"]
    x = jnp.where(x >= 0.0, x, 0.01 * x)
    mu, lv = x[:, :H], x[:, H:]
    c = eps * jnp.exp(0.5 * lv) + mu
    return outputs, hidden, c, mu, lv


# ----------------------------------------------------------------------------
if __name__ == "__main__":
    T, B, H, V = 8, 4, 32, 20      # seq_len, batch, hidden_size, vocab

    key = jax.random.PRNGKey(0)
    ks = jax.random.split(key, 16)
    bound = float(1.0 / (H ** 0.5))

    def u(k, shape):
        return jax.random.uniform(k, shape, jnp.float32, -bound, bound)

    raw = dict(
        emb=jax.random.normal(ks[0], (V, H), jnp.float32),          # nn.Embedding(V, H)
        w_ih_f=u(ks[1], (3 * H, H)), w_hh_f=u(ks[2], (3 * H, H)),   # GRU fwd (gates r,z,n)
        b_ih_f=u(ks[3], (3 * H,)),   b_hh_f=u(ks[4], (3 * H,)),
        w_ih_b=u(ks[5], (3 * H, H)), w_hh_b=u(ks[6], (3 * H, H)),   # GRU bwd
        b_ih_b=u(ks[7], (3 * H,)),   b_hh_b=u(ks[8], (3 * H,)),
        w_ca=u(ks[9], (2 * H, H)),   b_ca=u(ks[10], (2 * H,)),      # CA_NET fc
    )
    pp = pack_params(raw, H)

    input_seqs = jax.random.randint(ks[11], (T, B), 0, V, dtype=jnp.int32)
    input_lengths = jnp.array([8, 7, 5, 3], dtype=jnp.int32)  # sorted desc (pack_padded_sequence)
    # reparameterization noise passed explicitly (replaces torch.FloatTensor(...).normal_())
    eps = jax.random.normal(ks[12], (B, H), jnp.float32)

    fwd = jax.jit(text_encoder_forward)
    out, hid, c_code, mu, logvar = fwd(pp, input_seqs, input_lengths, eps)
    jax.block_until_ready((out, hid, c_code, mu, logvar))

    ref = reference_forward(raw, input_seqs, input_lengths, eps)
    names = ("outputs", "hidden", "c_code", "mu", "logvar")
    for nm, got, want in zip(names, (out, hid, c_code, mu, logvar), ref):
        assert got.shape == want.shape, (nm, got.shape, want.shape)
        assert jnp.allclose(got, want, atol=1e-4, rtol=1e-4), f"mismatch vs reference: {nm}"

    print("KERNEL_OK")
</pallas_src>

<mosaic_0001>
module attributes {stable_mosaic.version = 11 : i64} {
  func.func @text_encoder_kernel(%arg0: memref<8x8x128xf32, #tpu.memory_space<vmem>>, %arg1: memref<8x8x1xf32, #tpu.memory_space<vmem>>, %arg2: memref<128x256xf32, #tpu.memory_space<vmem>>, %arg3: memref<256x128xf32, #tpu.memory_space<vmem>>, %arg4: memref<2x128xf32, #tpu.memory_space<vmem>>, %arg5: memref<2x128xf32, #tpu.memory_space<vmem>>, %arg6: memref<128x256xf32, #tpu.memory_space<vmem>>, %arg7: memref<1x256xf32, #tpu.memory_space<vmem>>, %arg8: memref<4x128xf32, #tpu.memory_space<vmem>>, %arg9: memref<8x4x128xf32, #tpu.memory_space<vmem>>, %arg10: memref<2x4x128xf32, #tpu.memory_space<vmem>>, %arg11: memref<4x128xf32, #tpu.memory_space<vmem>>, %arg12: memref<4x128xf32, #tpu.memory_space<vmem>>, %arg13: memref<4x128xf32, #tpu.memory_space<vmem>>, %arg14: memref<8x8x128xf32, #tpu.memory_space<vmem>>, %arg15: memref<8x8x128xf32, #tpu.memory_space<vmem>>) attributes {dimension_semantics = [], scalar_prefetch = 0 : i64, scratch_operands = 2 : i64, tpu.core_type = #tpu.core_type<tc>} {
    %c0 = arith.constant 0 : index
    %c0_0 = arith.constant 0 : index
    %c0_1 = arith.constant 0 : index
    %0 = vector.load %arg0[%c0, %c0_0, %c0_1] : memref<8x8x128xf32, #tpu.memory_space<vmem>>, vector<8x8x128xf32>
    %1 = vector.shape_cast %0 : vector<8x8x128xf32> to vector<64x128xf32>
    %c0_2 = arith.constant 0 : index
    %c0_3 = arith.constant 0 : index
    %2 = vector.load %arg2[%c0_2, %c0_3] : memref<128x256xf32, #tpu.memory_space<vmem>>, vector<128x256xf32>
    %cst = arith.constant dense<0.000000e+00> : vector<64x256xf32>
    %3 = tpu.matmul %1, %2, %cst {dimension_numbers = #tpu.dot_dimension_numbers<[1], [0], [0], [1], [0, 0, 1, 1], [], []>} : vector<64x128xf32>, vector<128x256xf32>, vector<64x256xf32> -> vector<64x256xf32>
    %4 = vector.shape_cast %3 : vector<64x256xf32> to vector<8x8x256xf32>
    %5 = tpu.iota {dimensions = array<i32: 0>} : vector<8x128xi32>
    %c4_i32 = arith.constant 4 : i32
    %6 = vector.broadcast %c4_i32 : i32 to vector<8x128xi32>
    %7 = arith.cmpi slt, %5, %6 : vector<8x128xi32>
    %c0_4 = arith.constant 0 : index
    %c0_5 = arith.constant 0 : index
    %8 = vector.load %arg4[%c0_4, %c0_5] : memref<2x128xf32, #tpu.memory_space<vmem>>, vector<1x128xf32>
    %c1 = arith.constant 1 : index
    %c0_6 = arith.constant 0 : index
    %9 = vector.load %arg4[%c1, %c0_6] : memref<2x128xf32, #tpu.memory_space<vmem>>, vector<1x128xf32>
    %10 = vector.shape_cast %8 : vector<1x128xf32> to vector<1x128xf32>
    %11 = vector.broadcast %10 : vector<1x128xf32> to vector<8x128xf32>
    %12 = vector.shape_cast %9 : vector<1x128xf32> to vector<1x128xf32>
    %13 = vector.broadcast %12 : vector<1x128xf32> to vector<8x128xf32>
    %14 = arith.select %7, %11, %13 : vector<8x128xi1>, vector<8x128xf32>
    %c0_7 = arith.constant 0 : index
    %c0_8 = arith.constant 0 : index
    %15 = vector.load %arg5[%c0_7, %c0_8] : memref<2x128xf32, #tpu.memory_space<vmem>>, vector<1x128xf32>
    %c1_9 = arith.constant 1 : index
    %c0_10 = arith.constant 0 : index
    %16 = vector.load %arg5[%c1_9, %c0_10] : memref<2x128xf32, #tpu.memory_space<vmem>>, vector<1x128xf32>
    %17 = vector.shape_cast %15 : vector<1x128xf32> to vector<1x128xf32>
    %18 = vector.broadcast %17 : vector<1x128xf32> to vector<8x128xf32>
    %19 = vector.shape_cast %16 : vector<1x128xf32> to vector<1x128xf32>
    %20 = vector.broadcast %19 : vector<1x128xf32> to vector<8x128xf32>
    %21 = arith.select %7, %18, %20 : vector<8x128xi1>, vector<8x128xf32>
    %22 = arith.extui %7 : vector<8x128xi1> to vector<8x128xi32>
    %23 = arith.sitofp %22 : vector<8x128xi32> to vector<8x128xf32>
    %cst_11 = arith.constant 1.000000e+00 : f32
    %24 = vector.broadcast %cst_11 : f32 to vector<8x128xf32>
    %25 = arith.subf %24, %23 : vector<8x128xf32>
    %26 = vector.shape_cast %7 : vector<8x128xi1> to vector<1x8x128xi1>
    %27 = vector.extract_strided_slice %4 {offsets = [0, 0, 0], sizes = [8, 8, 128], strides = [1, 1, 1]} : vector<8x8x256xf32> to vector<8x8x128xf32>
    %28 = vector.extract_strided_slice %4 {offsets = [0, 0, 128], sizes = [8, 8, 128], strides = [1, 1, 1]} : vector<8x8x256xf32> to vector<8x8x128xf32>
    %29 = vector.shape_cast %26 : vector<1x8x128xi1> to vector<1x8x128xi1>
    %30 = vector.broadcast %29 : vector<1x8x128xi1> to vector<8x8x128xi1>
    %31 = arith.select %30, %27, %28 : vector<8x8x128xi1>, vector<8x8x128xf32>
    %32 = vector.shape_cast %14 : vector<8x128xf32> to vector<1x8x128xf32>
    %33 = vector.broadcast %32 : vector<1x8x128xf32> to vector<8x8x128xf32>
    %34 = arith.addf %31, %33 : vector<8x8x128xf32>
    %c0_12 = arith.constant 0 : index
    %c0_13 = arith.constant 0 : index
    %c0_14 = arith.constant 0 : index
    %35 = vector.load %arg14[%c0_12, %c0_13, %c0_14] : memref<8x8x128xf32, #tpu.memory_space<vmem>>, vector<8x8x128xf32>
    tpu.vector_store %arg14[%c0_12, %c0_13, %c0_14], %34 {strides = array<i32>} : memref<8x8x128xf32, #tpu.memory_space<vmem>>, vector<8x8x128xf32>,
    %cst_15 = arith.constant 0.000000e+00 : f32
    %36 = vector.broadcast %cst_15 : f32 to vector<8x256xf32>
    %c0_i32 = arith.constant 0 : i32
    %37 = arith.index_cast %c0_i32 : i32 to index
    %c0_16 = arith.constant 0 : index
    %c0_17 = arith.constant 0 : index
    %38 = vector.load %arg14[%37, %c0_16, %c0_17] : memref<8x8x128xf32, #tpu.memory_space<vmem>>, vector<1x8x128xf32>
    %39 = vector.shape_cast %38 : vector<1x8x128xf32> to vector<8x128xf32>
    %c0_18 = arith.constant 0 : index
    %c0_19 = arith.constant 0 : index
    %40 = vector.load %arg3[%c0_18, %c0_19] : memref<256x128xf32, #tpu.memory_space<vmem>>, vector<256x128xf32>
    %cst_20 = arith.constant dense<0.000000e+00> : vector<8x128xf32>
    %41 = tpu.matmul %36, %40, %cst_20 {dimension_numbers = #tpu.dot_dimension_numbers<[1], [0], [0], [1], [0, 0, 1, 1], [], []>} : vector<8x256xf32>, vector<256x128xf32>, vector<8x128xf32> -> vector<8x128xf32>
    %42 = arith.addf %39, %41 : vector<8x128xf32>
    %43 = arith.negf %42 : vector<8x128xf32>
    %44 = math.exp %43 : vector<8x128xf32>
    %cst_21 = arith.constant 1.000000e+00 : f32
    %45 = vector.broadcast %cst_21 : f32 to vector<8x128xf32>
    %46 = arith.addf %45, %44 : vector<8x128xf32>
    %47 = arith.divf %45, %46 : vector<8x128xf32>
    %48 = vector.extract_strided_slice %47 {offsets = [0, 32], sizes = [8, 96], strides = [1, 1]} : vector<8x128xf32> to vector<8x96xf32>
    %49 = vector.extract_strided_slice %47 {offsets = [0, 0], sizes = [8, 32], strides = [1, 1]} : vector<8x128xf32> to vector<8x32xf32>
    %50 = tpu.concatenate %48, %49 in 1 : vector<8x96xf32>, vector<8x32xf32> -> vector<8x128xf32>
    %51 = vector.extract_strided_slice %47 {offsets = [0, 64], sizes = [8, 64], strides = [1, 1]} : vector<8x128xf32> to vector<8x64xf32>
    %52 = vector.extract_strided_slice %47 {offsets = [0, 0], sizes = [8, 64], strides = [1, 1]} : vector<8x128xf32> to vector<8x64xf32>
    %53 = tpu.concatenate %51, %52 in 1 : vector<8x64xf32>, vector<8x64xf32> -> vector<8x128xf32>
    %54 = arith.addf %41, %21 : vector<8x128xf32>
    %55 = arith.mulf %50, %54 : vector<8x128xf32>
    %56 = arith.addf %39, %55 : vector<8x128xf32>
    %57 = math.tanh %56 : vector<8x128xf32>
    %58 = vector.extract_strided_slice %36 {offsets = [0, 0], sizes = [8, 128], strides = [1, 1]} : vector<8x256xf32> to vector<8x128xf32>
    %59 = vector.extract_strided_slice %36 {offsets = [0, 128], sizes = [8, 128], strides = [1, 1]} : vector<8x256xf32> to vector<8x128xf32>
    %60 = arith.addf %58, %59 : vector<8x128xf32>
    %61 = arith.subf %60, %57 : vector<8x128xf32>
    %62 = arith.mulf %53, %61 : vector<8x128xf32>
    %63 = arith.addf %57, %62 : vector<8x128xf32>
    %64 = arith.index_cast %c0_i32 : i32 to index
    %c0_22 = arith.constant 0 : index
    %c0_23 = arith.constant 0 : index
    %65 = vector.load %arg1[%64, %c0_22, %c0_23] : memref<8x8x1xf32, #tpu.memory_space<vmem>>, vector<1x8x1xf32>
    %66 = vector.shape_cast %65 : vector<1x8x1xf32> to vector<8x1xf32>
    %67 = vector.broadcast %66 : vector<8x1xf32> to vector<8x128xf32>
    %68 = arith.mulf %67, %63 : vector<8x128xf32>
    %69 = arith.index_cast %c0_i32 : i32 to index
    %c0_24 = arith.constant 0 : index
    %c0_25 = arith.constant 0 : index
    %70 = vector.load %arg15[%69, %c0_24, %c0_25] : memref<8x8x128xf32, #tpu.memory_space<vmem>>, vector<1x8x128xf32>
    %71 = vector.shape_cast %70 : vector<1x8x128xf32> to vector<8x128xf32>
    %72 = vector.shape_cast %68 : vector<8x128xf32> to vector<1x8x128xf32>
    tpu.vector_store %arg15[%69, %c0_24, %c0_25], %72 {strides = array<i32>} : memref<8x8x128xf32, #tpu.memory_space<vmem>>, vector<1x8x128xf32>,
    %73 = arith.subf %63, %60 : vector<8x128xf32>
    %74 = vector.broadcast %66 : vector<8x1xf32> to vector<8x128xf32>
    %75 = arith.mulf %74, %73 : vector<8x128xf32>
    %76 = arith.addf %60, %75 : vector<8x128xf32>
    %77 = arith.mulf %76, %23 : vector<8x128xf32>
    %78 = arith.mulf %76, %25 : vector<8x128xf32>
    %79 = tpu.concatenate %77, %78 in 1 : vector<8x128xf32>, vector<8x128xf32> -> vector<8x256xf32>
    %c1_i32 = arith.constant 1 : i32
    %80 = arith.index_cast %c1_i32 : i32 to index
    %c0_26 = arith.constant 0 : index
    %c0_27 = arith.constant 0 : index
    %81 = vector.load %arg14[%80, %c0_26, %c0_27] : memref<8x8x128xf32, #tpu.memory_space<vmem>>, vector<1x8x128xf32>
    %82 = vector.shape_cast %81 : vector<1x8x128xf32> to vector<8x128xf32>
    %c0_28 = arith.constant 0 : index
    %c0_29 = arith.constant 0 : index
    %83 = vector.load %arg3[%c0_28, %c0_29] : memref<256x128xf32, #tpu.memory_space<vmem>>, vector<256x128xf32>
    %cst_30 = arith.constant dense<0.000000e+00> : vector<8x128xf32>
    %84 = tpu.matmul %79, %83, %cst_30 {dimension_numbers = #tpu.dot_dimension_numbers<[1], [0], [0], [1], [0, 0, 1, 1], [], []>} : vector<8x256xf32>, vector<256x128xf32>, vector<8x128xf32> -> vector<8x128xf32>
    %85 = arith.addf %82, %84 : vector<8x128xf32>
    %86 = arith.negf %85 : vector<8x128xf32>
    %87 = math.exp %86 : vector<8x128xf32>
    %cst_31 = arith.constant 1.000000e+00 : f32
    %88 = vector.broadcast %cst_31 : f32 to vector<8x128xf32>
    %89 = arith.addf %88, %87 : vector<8x128xf32>
    %90 = arith.divf %88, %89 : vector<8x128xf32>
    %91 = vector.extract_strided_slice %90 {offsets = [0, 32], sizes = [8, 96], strides = [1, 1]} : vector<8x128xf32> to vector<8x96xf32>
    %92 = vector.extract_strided_slice %90 {offsets = [0, 0], sizes = [8, 32], strides = [1, 1]} : vector<8x128xf32> to vector<8x32xf32>
    %93 = tpu.concatenate %91, %92 in 1 : vector<8x96xf32>, vector<8x32xf32> -> vector<8x128xf32>
    %94 = vector.extract_strided_slice %90 {offsets = [0, 64], sizes = [8, 64], strides = [1, 1]} : vector<8x128xf32> to vector<8x64xf32>
    %95 = vector.extract_strided_slice %90 {offsets = [0, 0], sizes = [8, 64], strides = [1, 1]} : vector<8x128xf32> to vector<8x64xf32>
    %96 = tpu.concatenate %94, %95 in 1 : vector<8x64xf32>, vector<8x64xf32> -> vector<8x128xf32>
    %97 = arith.addf %84, %21 : vector<8x128xf32>
    %98 = arith.mulf %93, %97 : vector<8x128xf32>
    %99 = arith.addf %82, %98 : vector<8x128xf32>
    %100 = math.tanh %99 : vector<8x128xf32>
    %101 = vector.extract_strided_slice %79 {offsets = [0, 0], sizes = [8, 128], strides = [1, 1]} : vector<8x256xf32> to vector<8x128xf32>
    %102 = vector.extract_strided_slice %79 {offsets = [0, 128], sizes = [8, 128], strides = [1, 1]} : vector<8x256xf32> to vector<8x128xf32>
    %103 = arith.addf %101, %102 : vector<8x128xf32>
    %104 = arith.subf %103, %100 : vector<8x128xf32>
    %105 = arith.mulf %96, %104 : vector<8x128xf32>
    %106 = arith.addf %100, %105 : vector<8x128xf32>
    %107 = arith.index_cast %c1_i32 : i32 to index
    %c0_32 = arith.constant 0 : index
    %c0_33 = arith.constant 0 : index
    %108 = vector.load %arg1[%107, %c0_32, %c0_33] : memref<8x8x1xf32, #tpu.memory_space<vmem>>, vector<1x8x1xf32>
    %109 = vector.shape_cast %108 : vector<1x8x1xf32> to vector<8x1xf32>
    %110 = vector.broadcast %109 : vector<8x1xf32> to vector<8x128xf32>
    %111 = arith.mulf %110, %106 : vector<8x128xf32>
    %112 = arith.index_cast %c1_i32 : i32 to index
    %c0_34 = arith.constant 0 : index
    %c0_35 = arith.constant 0 : index
    %113 = vector.load %arg15[%112, %c0_34, %c0_35] : memref<8x8x128xf32, #tpu.memory_space<vmem>>, vector<1x8x128xf32>
    %114 = vector.shape_cast %113 : vector<1x8x128xf32> to vector<8x128xf32>
    %115 = vector.shape_cast %111 : vector<8x128xf32> to vector<1x8x128xf32>
    tpu.vector_store %arg15[%112, %c0_34, %c0_35], %115 {strides = array<i32>} : memref<8x8x128xf32, #tpu.memory_space<vmem>>, vector<1x8x128xf32>,
    %116 = arith.subf %106, %103 : vector<8x128xf32>
    %117 = vector.broadcast %109 : vector<8x1xf32> to vector<8x128xf32>
    %118 = arith.mulf %117, %116 : vector<8x128xf32>
    %119 = arith.addf %103, %118 : vector<8x128xf32>
    %120 = arith.mulf %119, %23 : vector<8x128xf32>
    %121 = arith.mulf %119, %25 : vector<8x128xf32>
    %122 = tpu.concatenate %120, %121 in 1 : vector<8x128xf32>, vector<8x128xf32> -> vector<8x256xf32>
    %c2_i32 = arith.constant 2 : i32
    %123 = arith.index_cast %c2_i32 : i32 to index
    %c0_36 = arith.constant 0 : index
    %c0_37 = arith.constant 0 : index
    %124 = vector.load %arg14[%123, %c0_36, %c0_37] : memref<8x8x128xf32, #tpu.memory_space<vmem>>, vector<1x8x128xf32>
    %125 = vector.shape_cast %124 : vector<1x8x128xf32> to vector<8x128xf32>
    %c0_38 = arith.constant 0 : index
    %c0_39 = arith.constant 0 : index
    %126 = vector.load %arg3[%c0_38, %c0_39] : memref<256x128xf32, #tpu.memory_space<vmem>>, vector<256x128xf32>
    %cst_40 = arith.constant dense<0.000000e+00> : vector<8x128xf32>
    %127 = tpu.matmul %122, %126, %cst_40 {dimension_numbers = #tpu.dot_dimension_numbers<[1], [0], [0], [1], [0, 0, 1, 1], [], []>} : vector<8x256xf32>, vector<256x128xf32>, vector<8x128xf32> -> vector<8x128xf32>
    %128 = arith.addf %125, %127 : vector<8x128xf32>
    %129 = arith.negf %128 : vector<8x128xf32>
    %130 = math.exp %129 : vector<8x128xf32>
    %cst_41 = arith.constant 1.000000e+00 : f32
    %131 = vector.broadcast %cst_41 : f32 to vector<8x128xf32>
    %132 = arith.addf %131, %130 : vector<8x128xf32>
    %133 = arith.divf %131, %132 : vector<8x128xf32>
    %134 = vector.extract_strided_slice %133 {offsets = [0, 32], sizes = [8, 96], strides = [1, 1]} : vector<8x128xf32> to vector<8x96xf32>
    %135 = vector.extract_strided_slice %133 {offsets = [0, 0], sizes = [8, 32], strides = [1, 1]} : vector<8x128xf32> to vector<8x32xf32>
    %136 = tpu.concatenate %134, %135 in 1 : vector<8x96xf32>, vector<8x32xf32> -> vector<8x128xf32>
    %137 = vector.extract_strided_slice %133 {offsets = [0, 64], sizes = [8, 64], strides = [1, 1]} : vector<8x128xf32> to vector<8x64xf32>
    %138 = vector.extract_strided_slice %133 {offsets = [0, 0], sizes = [8, 64], strides = [1, 1]} : vector<8x128xf32> to vector<8x64xf32>
    %139 = tpu.concatenate %137, %138 in 1 : vector<8x64xf32>, vector<8x64xf32> -> vector<8x128xf32>
    %140 = arith.addf %127, %21 : vector<8x128xf32>
    %141 = arith.mulf %136, %140 : vector<8x128xf32>
    %142 = arith.addf %125, %141 : vector<8x128xf32>
    %143 = math.tanh %142 : vector<8x128xf32>
    %144 = vector.extract_strided_slice %122 {offsets = [0, 0], sizes = [8, 128], strides = [1, 1]} : vector<8x256xf32> to vector<8x128xf32>
    %145 = vector.extract_strided_slice %122 {offsets = [0, 128], sizes = [8, 128], strides = [1, 1]} : vector<8x256xf32> to vector<8x128xf32>
    %146 = arith.addf %144, %145 : vector<8x128xf32>
    %147 = arith.subf %146, %143 : vector<8x128xf32>
    %148 = arith.mulf %139, %147 : vector<8x128xf32>
    %149 = arith.addf %143, %148 : vector<8x128xf32>
    %150 = arith.index_cast %c2_i32 : i32 to index
    %c0_42 = arith.constant 0 : index
    %c0_43 = arith.constant 0 : index
    %151 = vector.load %arg1[%150, %c0_42, %c0_43] : memref<8x8x1xf32, #tpu.memory_space<vmem>>, vector<1x8x1xf32>
    %152 = vector.shape_cast %151 : vector<1x8x1xf32> to vector<8x1xf32>
    %153 = vector.broadcast %152 : vector<8x1xf32> to vector<8x128xf32>
    %154 = arith.mulf %153, %149 : vector<8x128xf32>
    %155 = arith.index_cast %c2_i32 : i32 to index
    %c0_44 = arith.constant 0 : index
    %c0_45 = arith.constant 0 : index
    %156 = vector.load %arg15[%155, %c0_44, %c0_45] : memref<8x8x128xf32, #tpu.memory_space<vmem>>, vector<1x8x128xf32>
    %157 = vector.shape_cast %156 : vector<1x8x128xf32> to vector<8x128xf32>
    %158 = vector.shape_cast %154 : vector<8x128xf32> to vector<1x8x128xf32>
    tpu.vector_store %arg15[%155, %c0_44, %c0_45], %158 {strides = array<i32>} : memref<8x8x128xf32, #tpu.memory_space<vmem>>, vector<1x8x128xf32>,
    %159 = arith.subf %149, %146 : vector<8x128xf32>
    %160 = vector.broadcast %152 : vector<8x1xf32> to vector<8x128xf32>
    %161 = arith.mulf %160, %159 : vector<8x128xf32>
    %162 = arith.addf %146, %161 : vector<8x128xf32>
    %163 = arith.mulf %162, %23 : vector<8x128xf32>
    %164 = arith.mulf %162, %25 : vector<8x128xf32>
    %165 = tpu.concatenate %163, %164 in 1 : vector<8x128xf32>, vector<8x128xf32> -> vector<8x256xf32>
    %c3_i32 = arith.constant 3 : i32
    %166 = arith.index_cast %c3_i32 : i32 to index
    %c0_46 = arith.constant 0 : index
    %c0_47 = arith.constant 0 : index
    %167 = vector.load %arg14[%166, %c0_46, %c0_47] : memref<8x8x128xf32, #tpu.memory_space<vmem>>, vector<1x8x128xf32>
    %168 = vector.shape_cast %167 : vector<1x8x128xf32> to vector<8x128xf32>
    %c0_48 = arith.constant 0 : index
    %c0_49 = arith.constant 0 : index
    %169 = vector.load %arg3[%c0_48, %c0_49] : memref<256x128xf32, #tpu.memory_space<vmem>>, vector<256x128xf32>
    %cst_50 = arith.constant dense<0.000000e+00> : vector<8x128xf32>
    %170 = tpu.matmul %165, %169, %cst_50 {dimension_numbers = #tpu.dot_dimension_numbers<[1], [0], [0], [1], [0, 0, 1, 1], [], []>} : vector<8x256xf32>, vector<256x128xf32>, vector<8x128xf32> -> vector<8x128xf32>
    %171 = arith.addf %168, %170 : vector<8x128xf32>
    %172 = arith.negf %171 : vector<8x128xf32>
    %173 = math.exp %172 : vector<8x128xf32>
    %cst_51 = arith.constant 1.000000e+00 : f32
    %174 = vector.broadcast %cst_51 : f32 to vector<8x128xf32>
    %175 = arith.addf %174, %173 : vector<8x128xf32>
    %176 = arith.divf %174, %175 : vector<8x128xf32>
    %177 = vector.extract_strided_slice %176 {offsets = [0, 32], sizes = [8, 96], strides = [1, 1]} : vector<8x128xf32> to vector<8x96xf32>
    %178 = vector.extract_strided_slice %176 {offsets = [0, 0], sizes = [8, 32], strides = [1, 1]} : vector<8x128xf32> to vector<8x32xf32>
    %179 = tpu.concatenate %177, %178 in 1 : vector<8x96xf32>, vector<8x32xf32> -> vector<8x128xf32>
    %180 = vector.extract_strided_slice %176 {offsets = [0, 64], sizes = [8, 64], strides = [1, 1]} : vector<8x128xf32> to vector<8x64xf32>
    %181 = vector.extract_strided_slice %176 {offsets = [0, 0], sizes = [8, 64], strides = [1, 1]} : vector<8x128xf32> to vector<8x64xf32>
    %182 = tpu.concatenate %180, %181 in 1 : vector<8x64xf32>, vector<8x64xf32> -> vector<8x128xf32>
    %183 = arith.addf %170, %21 : vector<8x128xf32>
    %184 = arith.mulf %179, %183 : vector<8x128xf32>
    %185 = arith.addf %168, %184 : vector<8x128xf32>
    %186 = math.tanh %185 : vector<8x128xf32>
    %187 = vector.extract_strided_slice %165 {offsets = [0, 0], sizes = [8, 128], strides = [1, 1]} : vector<8x256xf32> to vector<8x128xf32>
    %188 = vector.extract_strided_slice %165 {offsets = [0, 128], sizes = [8, 128], strides = [1, 1]} : vector<8x256xf32> to vector<8x128xf32>
    %189 = arith.addf %187, %188 : vector<8x128xf32>
    %190 = arith.subf %189, %186 : vector<8x128xf32>
    %191 = arith.mulf %182, %190 : vector<8x128xf32>
    %192 = arith.addf %186, %191 : vector<8x128xf32>
    %193 = arith.index_cast %c3_i32 : i32 to index
    %c0_52 = arith.constant 0 : index
    %c0_53 = arith.constant 0 : index
    %194 = vector.load %arg1[%193, %c0_52, %c0_53] : memref<8x8x1xf32, #tpu.memory_space<vmem>>, vector<1x8x1xf32>
    %195 = vector.shape_cast %194 : vector<1x8x1xf32> to vector<8x1xf32>
    %196 = vector.broadcast %195 : vector<8x1xf32> to vector<8x128xf32>
    %197 = arith.mulf %196, %192 : vector<8x128xf32>
    %198 = arith.index_cast %c3_i32 : i32 to index
    %c0_54 = arith.constant 0 : index
    %c0_55 = arith.constant 0 : index
    %199 = vector.load %arg15[%198, %c0_54, %c0_55] : memref<8x8x128xf32, #tpu.memory_space<vmem>>, vector<1x8x128xf32>
    %200 = vector.shape_cast %199 : vector<1x8x128xf32> to vector<8x128xf32>
    %201 = vector.shape_cast %197 : vector<8x128xf32> to vector<1x8x128xf32>
    tpu.vector_store %arg15[%198, %c0_54, %c0_55], %201 {strides = array<i32>} : memref<8x8x128xf32, #tpu.memory_space<vmem>>, vector<1x8x128xf32>,
    %202 = arith.subf %192, %189 : vector<8x128xf32>
    %203 = vector.broadcast %195 : vector<8x1xf32> to vector<8x128xf32>
    %204 = arith.mulf %203, %202 : vector<8x128xf32>
    %205 = arith.addf %189, %204 : vector<8x128xf32>
    %206 = arith.mulf %205, %23 : vector<8x128xf32>
    %207 = arith.mulf %205, %25 : vector<8x128xf32>
    %208 = tpu.concatenate %206, %207 in 1 : vector<8x128xf32>, vector<8x128xf32> -> vector<8x256xf32>
    %c4_i32_56 = arith.constant 4 : i32
    %209 = arith.index_cast %c4_i32_56 : i32 to index
    %c0_57 = arith.constant 0 : index
    %c0_58 = arith.constant 0 : index
    %210 = vector.load %arg14[%209, %c0_57, %c0_58] : memref<8x8x128xf32, #tpu.memory_space<vmem>>, vector<1x8x128xf32>
    %211 = vector.shape_cast %210 : vector<1x8x128xf32> to vector<8x128xf32>
    %c0_59 = arith.constant 0 : index
    %c0_60 = arith.constant 0 : index
    %212 = vector.load %arg3[%c0_59, %c0_60] : memref<256x128xf32, #tpu.memory_space<vmem>>, vector<256x128xf32>
    %cst_61 = arith.constant dense<0.000000e+00> : vector<8x128xf32>
    %213 = tpu.matmul %208, %212, %cst_61 {dimension_numbers = #tpu.dot_dimension_numbers<[1], [0], [0], [1], [0, 0, 1, 1], [], []>} : vector<8x256xf32>, vector<256x128xf32>, vector<8x128xf32> -> vector<8x128xf32>
    %214 = arith.addf %211, %213 : vector<8x128xf32>
    %215 = arith.negf %214 : vector<8x128xf32>
    %216 = math.exp %215 : vector<8x128xf32>
    %cst_62 = arith.constant 1.000000e+00 : f32
    %217 = vector.broadcast %cst_62 : f32 to vector<8x128xf32>
    %218 = arith.addf %217, %216 : vector<8x128xf32>
    %219 = arith.divf %217, %218 : vector<8x128xf32>
    %220 = vector.extract_strided_slice %219 {offsets = [0, 32], sizes = [8, 96], strides = [1, 1]} : vector<8x128xf32> to vector<8x96xf32>
    %221 = vector.extract_strided_slice %219 {offsets = [0, 0], sizes = [8, 32], strides = [1, 1]} : vector<8x128xf32> to vector<8x32xf32>
    %222 = tpu.concatenate %220, %221 in 1 : vector<8x96xf32>, vector<8x32xf32> -> vector<8x128xf32>
    %223 = vector.extract_strided_slice %219 {offsets = [0, 64], sizes = [8, 64], strides = [1, 1]} : vector<8x128xf32> to vector<8x64xf32>
    %224 = vector.extract_strided_slice %219 {offsets = [0, 0], sizes = [8, 64], strides = [1, 1]} : vector<8x128xf32> to vector<8x64xf32>
    %225 = tpu.concatenate %223, %224 in 1 : vector<8x64xf32>, vector<8x64xf32> -> vector<8x128xf32>
    %226 = arith.addf %213, %21 : vector<8x128xf32>
    %227 = arith.mulf %222, %226 : vector<8x128xf32>
    %228 = arith.addf %211, %227 : vector<8x128xf32>
    %229 = math.tanh %228 : vector<8x128xf32>
    %230 = vector.extract_strided_slice %208 {offsets = [0, 0], sizes = [8, 128], strides = [1, 1]} : vector<8x256xf32> to vector<8x128xf32>
    %231 = vector.extract_strided_slice %208 {offsets = [0, 128], sizes = [8, 128], strides = [1, 1]} : vector<8x256xf32> to vector<8x128xf32>
    %232 = arith.addf %230, %231 : vector<8x128xf32>
    %233 = arith.subf %232, %229 : vector<8x128xf32>
    %234 = arith.mulf %225, %233 : vector<8x128xf32>
    %235 = arith.addf %229, %234 : vector<8x128xf32>
    %236 = arith.index_cast %c4_i32_56 : i32 to index
    %c0_63 = arith.constant 0 : index
    %c0_64 = arith.constant 0 : index
    %237 = vector.load %arg1[%236, %c0_63, %c0_64] : memref<8x8x1xf32, #tpu.memory_space<vmem>>, vector<1x8x1xf32>
    %238 = vector.shape_cast %237 : vector<1x8x1xf32> to vector<8x1xf32>
    %239 = vector.broadcast %238 : vector<8x1xf32> to vector<8x128xf32>
    %240 = arith.mulf %239, %235 : vector<8x128xf32>
    %241 = arith.index_cast %c4_i32_56 : i32 to index
    %c0_65 = arith.constant 0 : index
    %c0_66 = arith.constant 0 : index
    %242 = vector.load %arg15[%241, %c0_65, %c0_66] : memref<8x8x128xf32, #tpu.memory_space<vmem>>, vector<1x8x128xf32>
    %243 = vector.shape_cast %242 : vector<1x8x128xf32> to vector<8x128xf32>
    %244 = vector.shape_cast %240 : vector<8x128xf32> to vector<1x8x128xf32>
    tpu.vector_store %arg15[%241, %c0_65, %c0_66], %244 {strides = array<i32>} : memref<8x8x128xf32, #tpu.memory_space<vmem>>, vector<1x8x128xf32>,
    %245 = arith.subf %235, %232 : vector<8x128xf32>
    %246 = vector.broadcast %238 : vector<8x1xf32> to vector<8x128xf32>
    %247 = arith.mulf %246, %245 : vector<8x128xf32>
    %248 = arith.addf %232, %247 : vector<8x128xf32>
    %249 = arith.mulf %248, %23 : vector<8x128xf32>
    %250 = arith.mulf %248, %25 : vector<8x128xf32>
    %251 = tpu.concatenate %249, %250 in 1 : vector<8x128xf32>, vector<8x128xf32> -> vector<8x256xf32>
    %c5_i32 = arith.constant 5 : i32
    %252 = arith.index_cast %c5_i32 : i32 to index
    %c0_67 = arith.constant 0 : index
    %c0_68 = arith.constant 0 : index
    %253 = vector.load %arg14[%252, %c0_67, %c0_68] : memref<8x8x128xf32, #tpu.memory_space<vmem>>, vector<1x8x128xf32>
    %254 = vector.shape_cast %253 : vector<1x8x128xf32> to vector<8x128xf32>
    %c0_69 = arith.constant 0 : index
    %c0_70 = arith.constant 0 : index
    %255 = vector.load %arg3[%c0_69, %c0_70] : memref<256x128xf32, #tpu.memory_space<vmem>>, vector<256x128xf32>
    %cst_71 = arith.constant dense<0.000000e+00> : vector<8x128xf32>
    %256 = tpu.matmul %251, %255, %cst_71 {dimension_numbers = #tpu.dot_dimension_numbers<[1], [0], [0], [1], [0, 0, 1, 1], [], []>} : vector<8x256xf32>, vector<256x128xf32>, vector<8x128xf32> -> vector<8x128xf32>
    %257 = arith.addf %254, %256 : vector<8x128xf32>
    %258 = arith.negf %257 : vector<8x128xf32>
    %259 = math.exp %258 : vector<8x128xf32>
    %cst_72 = arith.constant 1.000000e+00 : f32
    %260 = vector.broadcast %cst_72 : f32 to vector<8x128xf32>
    %261 = arith.addf %260, %259 : vector<8x128xf32>
    %262 = arith.divf %260, %261 : vector<8x128xf32>
    %263 = vector.extract_strided_slice %262 {offsets = [0, 32], sizes = [8, 96], strides = [1, 1]} : vector<8x128xf32> to vector<8x96xf32>
    %264 = vector.extract_strided_slice %262 {offsets = [0, 0], sizes = [8, 32], strides = [1, 1]} : vector<8x128xf32> to vector<8x32xf32>
    %265 = tpu.concatenate %263, %264 in 1 : vector<8x96xf32>, vector<8x32xf32> -> vector<8x128xf32>
    %266 = vector.extract_strided_slice %262 {offsets = [0, 64], sizes = [8, 64], strides = [1, 1]} : vector<8x128xf32> to vector<8x64xf32>
    %267 = vector.extract_strided_slice %262 {offsets = [0, 0], sizes = [8, 64], strides = [1, 1]} : vector<8x128xf32> to vector<8x64xf32>
    %268 = tpu.concatenate %266, %267 in 1 : vector<8x64xf32>, vector<8x64xf32> -> vector<8x128xf32>
    %269 = arith.addf %256, %21 : vector<8x128xf32>
    %270 = arith.mulf %265, %269 : vector<8x128xf32>
    %271 = arith.addf %254, %270 : vector<8x128xf32>
    %272 = math.tanh %271 : vector<8x128xf32>
    %273 = vector.extract_strided_slice %251 {offsets = [0, 0], sizes = [8, 128], strides = [1, 1]} : vector<8x256xf32> to vector<8x128xf32>
    %274 = vector.extract_strided_slice %251 {offsets = [0, 128], sizes = [8, 128], strides = [1, 1]} : vector<8x256xf32> to vector<8x128xf32>
    %275 = arith.addf %273, %274 : vector<8x128xf32>
    %276 = arith.subf %275, %272 : vector<8x128xf32>
    %277 = arith.mulf %268, %276 : vector<8x128xf32>
    %278 = arith.addf %272, %277 : vector<8x128xf32>
    %279 = arith.index_cast %c5_i32 : i32 to index
    %c0_73 = arith.constant 0 : index
    %c0_74 = arith.constant 0 : index
    %280 = vector.load %arg1[%279, %c0_73, %c0_74] : memref<8x8x1xf32, #tpu.memory_space<vmem>>, vector<1x8x1xf32>
    %281 = vector.shape_cast %280 : vector<1x8x1xf32> to vector<8x1xf32>
    %282 = vector.broadcast %281 : vector<8x1xf32> to vector<8x128xf32>
    %283 = arith.mulf %282, %278 : vector<8x128xf32>
    %284 = arith.index_cast %c5_i32 : i32 to index
    %c0_75 = arith.constant 0 : index
    %c0_76 = arith.constant 0 : index
    %285 = vector.load %arg15[%284, %c0_75, %c0_76] : memref<8x8x128xf32, #tpu.memory_space<vmem>>, vector<1x8x128xf32>
    %286 = vector.shape_cast %285 : vector<1x8x128xf32> to vector<8x128xf32>
    %287 = vector.shape_cast %283 : vector<8x128xf32> to vector<1x8x128xf32>
    tpu.vector_store %arg15[%284, %c0_75, %c0_76], %287 {strides = array<i32>} : memref<8x8x128xf32, #tpu.memory_space<vmem>>, vector<1x8x128xf32>,
    %288 = arith.subf %278, %275 : vector<8x128xf32>
    %289 = vector.broadcast %281 : vector<8x1xf32> to vector<8x128xf32>
    %290 = arith.mulf %289, %288 : vector<8x128xf32>
    %291 = arith.addf %275, %290 : vector<8x128xf32>
    %292 = arith.mulf %291, %23 : vector<8x128xf32>
    %293 = arith.mulf %291, %25 : vector<8x128xf32>
    %294 = tpu.concatenate %292, %293 in 1 : vector<8x128xf32>, vector<8x128xf32> -> vector<8x256xf32>
    %c6_i32 = arith.constant 6 : i32
    %295 = arith.index_cast %c6_i32 : i32 to index
    %c0_77 = arith.constant 0 : index
    %c0_78 = arith.constant 0 : index
    %296 = vector.load %arg14[%295, %c0_77, %c0_78] : memref<8x8x128xf32, #tpu.memory_space<vmem>>, vector<1x8x128xf32>
    %297 = vector.shape_cast %296 : vector<1x8x128xf32> to vector<8x128xf32>
    %c0_79 = arith.constant 0 : index
    %c0_80 = arith.constant 0 : index
    %298 = vector.load %arg3[%c0_79, %c0_80] : memref<256x128xf32, #tpu.memory_space<vmem>>, vector<256x128xf32>
    %cst_81 = arith.constant dense<0.000000e+00> : vector<8x128xf32>
    %299 = tpu.matmul %294, %298, %cst_81 {dimension_numbers = #tpu.dot_dimension_numbers<[1], [0], [0], [1], [0, 0, 1, 1], [], []>} : vector<8x256xf32>, vector<256x128xf32>, vector<8x128xf32> -> vector<8x128xf32>
    %300 = arith.addf %297, %299 : vector<8x128xf32>
    %301 = arith.negf %300 : vector<8x128xf32>
    %302 = math.exp %301 : vector<8x128xf32>
    %cst_82 = arith.constant 1.000000e+00 : f32
    %303 = vector.broadcast %cst_82 : f32 to vector<8x128xf32>
    %304 = arith.addf %303, %302 : vector<8x128xf32>
    %305 = arith.divf %303, %304 : vector<8x128xf32>
    %306 = vector.extract_strided_slice %305 {offsets = [0, 32], sizes = [8, 96], strides = [1, 1]} : vector<8x128xf32> to vector<8x96xf32>
    %307 = vector.extract_strided_slice %305 {offsets = [0, 0], sizes = [8, 32], strides = [1, 1]} : vector<8x128xf32> to vector<8x32xf32>
    %308 = tpu.concatenate %306, %307 in 1 : vector<8x96xf32>, vector<8x32xf32> -> vector<8x128xf32>
    %309 = vector.extract_strided_slice %305 {offsets = [0, 64], sizes = [8, 64], strides = [1, 1]} : vector<8x128xf32> to vector<8x64xf32>
    %310 = vector.extract_strided_slice %305 {offsets = [0, 0], sizes = [8, 64], strides = [1, 1]} : vector<8x128xf32> to vector<8x64xf32>
    %311 = tpu.concatenate %309, %310 in 1 : vector<8x64xf32>, vector<8x64xf32> -> vector<8x128xf32>
    %312 = arith.addf %299, %21 : vector<8x128xf32>
    %313 = arith.mulf %308, %312 : vector<8x128xf32>
    %314 = arith.addf %297, %313 : vector<8x128xf32>
    %315 = math.tanh %314 : vector<8x128xf32>
    %316 = vector.extract_strided_slice %294 {offsets = [0, 0], sizes = [8, 128], strides = [1, 1]} : vector<8x256xf32> to vector<8x128xf32>
    %317 = vector.extract_strided_slice %294 {offsets = [0, 128], sizes = [8, 128], strides = [1, 1]} : vector<8x256xf32> to vector<8x128xf32>
    %318 = arith.addf %316, %317 : vector<8x128xf32>
    %319 = arith.subf %318, %315 : vector<8x128xf32>
    %320 = arith.mulf %311, %319 : vector<8x128xf32>
    %321 = arith.addf %315, %320 : vector<8x128xf32>
    %322 = arith.index_cast %c6_i32 : i32 to index
    %c0_83 = arith.constant 0 : index
    %c0_84 = arith.constant 0 : index
    %323 = vector.load %arg1[%322, %c0_83, %c0_84] : memref<8x8x1xf32, #tpu.memory_space<vmem>>, vector<1x8x1xf32>
    %324 = vector.shape_cast %323 : vector<1x8x1xf32> to vector<8x1xf32>
    %325 = vector.broadcast %324 : vector<8x1xf32> to vector<8x128xf32>
    %326 = arith.mulf %325, %321 : vector<8x128xf32>
    %327 = arith.index_cast %c6_i32 : i32 to index
    %c0_85 = arith.constant 0 : index
    %c0_86 = arith.constant 0 : index
    %328 = vector.load %arg15[%327, %c0_85, %c0_86] : memref<8x8x128xf32, #tpu.memory_space<vmem>>, vector<1x8x128xf32>
    %329 = vector.shape_cast %328 : vector<1x8x128xf32> to vector<8x128xf32>
    %330 = vector.shape_cast %326 : vector<8x128xf32> to vector<1x8x128xf32>
    tpu.vector_store %arg15[%327, %c0_85, %c0_86], %330 {strides = array<i32>} : memref<8x8x128xf32, #tpu.memory_space<vmem>>, vector<1x8x128xf32>,
    %331 = arith.subf %321, %318 : vector<8x128xf32>
    %332 = vector.broadcast %324 : vector<8x1xf32> to vector<8x128xf32>
    %333 = arith.mulf %332, %331 : vector<8x128xf32>
    %334 = arith.addf %318, %333 : vector<8x128xf32>
    %335 = arith.mulf %334, %23 : vector<8x128xf32>
    %336 = arith.mulf %334, %25 : vector<8x128xf32>
    %337 = tpu.concatenate %335, %336 in 1 : vector<8x128xf32>, vector<8x128xf32> -> vector<8x256xf32>
    %c7_i32 = arith.constant 7 : i32
    %338 = arith.index_cast %c7_i32 : i32 to index
    %c0_87 = arith.constant 0 : index
    %c0_88 = arith.constant 0 : index
    %339 = vector.load %arg14[%338, %c0_87, %c0_88] : memref<8x8x128xf32, #tpu.memory_space<vmem>>, vector<1x8x128xf32>
    %340 = vector.shape_cast %339 : vector<1x8x128xf32> to vector<8x128xf32>
    %c0_89 = arith.constant 0 : index
    %c0_90 = arith.constant 0 : index
    %341 = vector.load %arg3[%c0_89, %c0_90] : memref<256x128xf32, #tpu.memory_space<vmem>>, vector<256x128xf32>
    %cst_91 = arith.constant dense<0.000000e+00> : vector<8x128xf32>
    %342 = tpu.matmul %337, %341, %cst_91 {dimension_numbers = #tpu.dot_dimension_numbers<[1], [0], [0], [1], [0, 0, 1, 1], [], []>} : vector<8x256xf32>, vector<256x128xf32>, vector<8x128xf32> -> vector<8x128xf32>
    %343 = arith.addf %340, %342 : vector<8x128xf32>
    %344 = arith.negf %343 : vector<8x128xf32>
    %345 = math.exp %344 : vector<8x128xf32>
    %cst_92 = arith.constant 1.000000e+00 : f32
    %346 = vector.broadcast %cst_92 : f32 to vector<8x128xf32>
    %347 = arith.addf %346, %345 : vector<8x128xf32>
    %348 = arith.divf %346, %347 : vector<8x128xf32>
    %349 = vector.extract_strided_slice %348 {offsets = [0, 32], sizes = [8, 96], strides = [1, 1]} : vector<8x128xf32> to vector<8x96xf32>
    %350 = vector.extract_strided_slice %348 {offsets = [0, 0], sizes = [8, 32], strides = [1, 1]} : vector<8x128xf32> to vector<8x32xf32>
    %351 = tpu.concatenate %349, %350 in 1 : vector<8x96xf32>, vector<8x32xf32> -> vector<8x128xf32>
    %352 = vector.extract_strided_slice %348 {offsets = [0, 64], sizes = [8, 64], strides = [1, 1]} : vector<8x128xf32> to vector<8x64xf32>
    %353 = vector.extract_strided_slice %348 {offsets = [0, 0], sizes = [8, 64], strides = [1, 1]} : vector<8x128xf32> to vector<8x64xf32>
    %354 = tpu.concatenate %352, %353 in 1 : vector<8x64xf32>, vector<8x64xf32> -> vector<8x128xf32>
    %355 = arith.addf %342, %21 : vector<8x128xf32>
    %356 = arith.mulf %351, %355 : vector<8x128xf32>
    %357 = arith.addf %340, %356 : vector<8x128xf32>
    %358 = math.tanh %357 : vector<8x128xf32>
    %359 = vector.extract_strided_slice %337 {offsets = [0, 0], sizes = [8, 128], strides = [1, 1]} : vector<8x256xf32> to vector<8x128xf32>
    %360 = vector.extract_strided_slice %337 {offsets = [0, 128], sizes = [8, 128], strides = [1, 1]} : vector<8x256xf32> to vector<8x128xf32>
    %361 = arith.addf %359, %360 : vector<8x128xf32>
    %362 = arith.subf %361, %358 : vector<8x128xf32>
    %363 = arith.mulf %354, %362 : vector<8x128xf32>
    %364 = arith.addf %358, %363 : vector<8x128xf32>
    %365 = arith.index_cast %c7_i32 : i32 to index
    %c0_93 = arith.constant 0 : index
    %c0_94 = arith.constant 0 : index
    %366 = vector.load %arg1[%365, %c0_93, %c0_94] : memref<8x8x1xf32, #tpu.memory_space<vmem>>, vector<1x8x1xf32>
    %367 = vector.shape_cast %366 : vector<1x8x1xf32> to vector<8x1xf32>
    %368 = vector.broadcast %367 : vector<8x1xf32> to vector<8x128xf32>
    %369 = arith.mulf %368, %364 : vector<8x128xf32>
    %370 = arith.index_cast %c7_i32 : i32 to index
    %c0_95 = arith.constant 0 : index
    %c0_96 = arith.constant 0 : index
    %371 = vector.load %arg15[%370, %c0_95, %c0_96] : memref<8x8x128xf32, #tpu.memory_space<vmem>>, vector<1x8x128xf32>
    %372 = vector.shape_cast %371 : vector<1x8x128xf32> to vector<8x128xf32>
    %373 = vector.shape_cast %369 : vector<8x128xf32> to vector<1x8x128xf32>
    tpu.vector_store %arg15[%370, %c0_95, %c0_96], %373 {strides = array<i32>} : memref<8x8x128xf32, #tpu.memory_space<vmem>>, vector<1x8x128xf32>,
    %374 = arith.subf %364, %361 : vector<8x128xf32>
    %375 = vector.broadcast %367 : vector<8x1xf32> to vector<8x128xf32>
    %376 = arith.mulf %375, %374 : vector<8x128xf32>
    %377 = arith.addf %361, %376 : vector<8x128xf32>
    %378 = arith.mulf %377, %23 : vector<8x128xf32>
    %379 = arith.mulf %377, %25 : vector<8x128xf32>
    %380 = tpu.concatenate %378, %379 in 1 : vector<8x128xf32>, vector<8x128xf32> -> vector<8x256xf32>
    %c8_i32 = arith.constant 8 : i32
    %c0_97 = arith.constant 0 : index
    %c0_98 = arith.constant 0 : index
    %c0_99 = arith.constant 0 : index
    %381 = vector.load %arg15[%c0_97, %c0_98, %c0_99] : memref<8x8x128xf32, #tpu.memory_space<vmem>>, vector<1x8x128xf32>
    %382 = vector.shape_cast %381 : vector<1x8x128xf32> to vector<8x128xf32>
    %c7 = arith.constant 7 : index
    %c0_100 = arith.constant 0 : index
    %c0_101 = arith.constant 0 : index
    %383 = vector.load %arg15[%c7, %c0_100, %c0_101] : memref<8x8x128xf32, #tpu.memory_space<vmem>>, vector<1x8x128xf32>
    %384 = vector.shape_cast %383 : vector<1x8x128xf32> to vector<8x128xf32>
    %385 = vector.extract_strided_slice %382 {offsets = [0, 0], sizes = [4, 128], strides = [1, 1]} : vector<8x128xf32> to vector<4x128xf32>
    %386 = vector.extract_strided_slice %384 {offsets = [4, 0], sizes = [4, 128], strides = [1, 1]} : vector<8x128xf32> to vector<4x128xf32>
    %387 = arith.addf %385, %386 : vector<4x128xf32>
    %c0_102 = arith.constant 0 : index
    %c0_103 = arith.constant 0 : index
    %c0_104 = arith.constant 0 : index
    %388 = vector.load %arg9[%c0_102, %c0_103, %c0_104] : memref<8x4x128xf32, #tpu.memory_space<vmem>>, vector<1x4x128xf32>
    %389 = vector.shape_cast %388 : vector<1x4x128xf32> to vector<4x128xf32>
    %390 = vector.shape_cast %387 : vector<4x128xf32> to vector<1x4x128xf32>
    tpu.vector_store %arg9[%c0_102, %c0_103, %c0_104], %390 {strides = array<i32>} : memref<8x4x128xf32, #tpu.memory_space<vmem>>, vector<1x4x128xf32>,
    %c1_105 = arith.constant 1 : index
    %c0_106 = arith.constant 0 : index
    %c0_107 = arith.constant 0 : index
    %391 = vector.load %arg15[%c1_105, %c0_106, %c0_107] : memref<8x8x128xf32, #tpu.memory_space<vmem>>, vector<1x8x128xf32>
    %392 = vector.shape_cast %391 : vector<1x8x128xf32> to vector<8x128xf32>
    %c6 = arith.constant 6 : index
    %c0_108 = arith.constant 0 : index
    %c0_109 = arith.constant 0 : index
    %393 = vector.load %arg15[%c6, %c0_108, %c0_109] : memref<8x8x128xf32, #tpu.memory_space<vmem>>, vector<1x8x128xf32>
    %394 = vector.shape_cast %393 : vector<1x8x128xf32> to vector<8x128xf32>
    %395 = vector.extract_strided_slice %392 {offsets = [0, 0], sizes = [4, 128], strides = [1, 1]} : vector<8x128xf32> to vector<4x128xf32>
    %396 = vector.extract_strided_slice %394 {offsets = [4, 0], sizes = [4, 128], strides = [1, 1]} : vector<8x128xf32> to vector<4x128xf32>
    %397 = arith.addf %395, %396 : vector<4x128xf32>
    %c1_110 = arith.constant 1 : index
    %c0_111 = arith.constant 0 : index
    %c0_112 = arith.constant 0 : index
    %398 = vector.load %arg9[%c1_110, %c0_111, %c0_112] : memref<8x4x128xf32, #tpu.memory_space<vmem>>, vector<1x4x128xf32>
    %399 = vector.shape_cast %398 : vector<1x4x128xf32> to vector<4x128xf32>
    %400 = vector.shape_cast %397 : vector<4x128xf32> to vector<1x4x128xf32>
    tpu.vector_store %arg9[%c1_110, %c0_111, %c0_112], %400 {strides = array<i32>} : memref<8x4x128xf32, #tpu.memory_space<vmem>>, vector<1x4x128xf32>,
    %c2 = arith.constant 2 : index
    %c0_113 = arith.constant 0 : index
    %c0_114 = arith.constant 0 : index
    %401 = vector.load %arg15[%c2, %c0_113, %c0_114] : memref<8x8x128xf32, #tpu.memory_space<vmem>>, vector<1x8x128xf32>
    %402 = vector.shape_cast %401 : vector<1x8x128xf32> to vector<8x128xf32>
    %c5 = arith.constant 5 : index
    %c0_115 = arith.constant 0 : index
    %c0_116 = arith.constant 0 : index
    %403 = vector.load %arg15[%c5, %c0_115, %c0_116] : memref<8x8x128xf32, #tpu.memory_space<vmem>>, vector<1x8x128xf32>
    %404 = vector.shape_cast %403 : vector<1x8x128xf32> to vector<8x128xf32>
    %405 = vector.extract_strided_slice %402 {offsets = [0, 0], sizes = [4, 128], strides = [1, 1]} : vector<8x128xf32> to vector<4x128xf32>
    %406 = vector.extract_strided_slice %404 {offsets = [4, 0], sizes = [4, 128], strides = [1, 1]} : vector<8x128xf32> to vector<4x128xf32>
    %407 = arith.addf %405, %406 : vector<4x128xf32>
    %c2_117 = arith.constant 2 : index
    %c0_118 = arith.constant 0 : index
    %c0_119 = arith.constant 0 : index
    %408 = vector.load %arg9[%c2_117, %c0_118, %c0_119] : memref<8x4x128xf32, #tpu.memory_space<vmem>>, vector<1x4x128xf32>
    %409 = vector.shape_cast %408 : vector<1x4x128xf32> to vector<4x128xf32>
    %410 = vector.shape_cast %407 : vector<4x128xf32> to vector<1x4x128xf32>
    tpu.vector_store %arg9[%c2_117, %c0_118, %c0_119], %410 {strides = array<i32>} : memref<8x4x128xf32, #tpu.memory_space<vmem>>, vector<1x4x128xf32>,
    %c3 = arith.constant 3 : index
    %c0_120 = arith.constant 0 : index
    %c0_121 = arith.constant 0 : index
    %411 = vector.load %arg15[%c3, %c0_120, %c0_121] : memref<8x8x128xf32, #tpu.memory_space<vmem>>, vector<1x8x128xf32>
    %412 = vector.shape_cast %411 : vector<1x8x128xf32> to vector<8x128xf32>
    %c4 = arith.constant 4 : index
    %c0_122 = arith.constant 0 : index
    %c0_123 = arith.constant 0 : index
    %413 = vector.load %arg15[%c4, %c0_122, %c0_123] : memref<8x8x128xf32, #tpu.memory_space<vmem>>, vector<1x8x128xf32>
    %414 = vector.shape_cast %413 : vector<1x8x128xf32> to vector<8x128xf32>
    %415 = vector.extract_strided_slice %412 {offsets = [0, 0], sizes = [4, 128], strides = [1, 1]} : vector<8x128xf32> to vector<4x128xf32>
    %416 = vector.extract_strided_slice %414 {offsets = [4, 0], sizes = [4, 128], strides = [1, 1]} : vector<8x128xf32> to vector<4x128xf32>
    %417 = arith.addf %415, %416 : vector<4x128xf32>
    %c3_124 = arith.constant 3 : index
    %c0_125 = arith.constant 0 : index
    %c0_126 = arith.constant 0 : index
    %418 = vector.load %arg9[%c3_124, %c0_125, %c0_126] : memref<8x4x128xf32, #tpu.memory_space<vmem>>, vector<1x4x128xf32>
    %419 = vector.shape_cast %418 : vector<1x4x128xf32> to vector<4x128xf32>
    %420 = vector.shape_cast %417 : vector<4x128xf32> to vector<1x4x128xf32>
    tpu.vector_store %arg9[%c3_124, %c0_125, %c0_126], %420 {strides = array<i32>} : memref<8x4x128xf32, #tpu.memory_space<vmem>>, vector<1x4x128xf32>,
    %c4_127 = arith.constant 4 : index
    %c0_128 = arith.constant 0 : index
    %c0_129 = arith.constant 0 : index
    %421 = vector.load %arg15[%c4_127, %c0_128, %c0_129] : memref<8x8x128xf32, #tpu.memory_space<vmem>>, vector<1x8x128xf32>
    %422 = vector.shape_cast %421 : vector<1x8x128xf32> to vector<8x128xf32>
    %c3_130 = arith.constant 3 : index
    %c0_131 = arith.constant 0 : index
    %c0_132 = arith.constant 0 : index
    %423 = vector.load %arg15[%c3_130, %c0_131, %c0_132] : memref<8x8x128xf32, #tpu.memory_space<vmem>>, vector<1x8x128xf32>
    %424 = vector.shape_cast %423 : vector<1x8x128xf32> to vector<8x128xf32>
    %425 = vector.extract_strided_slice %422 {offsets = [0, 0], sizes = [4, 128], strides = [1, 1]} : vector<8x128xf32> to vector<4x128xf32>
    %426 = vector.extract_strided_slice %424 {offsets = [4, 0], sizes = [4, 128], strides = [1, 1]} : vector<8x128xf32> to vector<4x128xf32>
    %427 = arith.addf %425, %426 : vector<4x128xf32>
    %c4_133 = arith.constant 4 : index
    %c0_134 = arith.constant 0 : index
    %c0_135 = arith.constant 0 : index
    %428 = vector.load %arg9[%c4_133, %c0_134, %c0_135] : memref<8x4x128xf32, #tpu.memory_space<vmem>>, vector<1x4x128xf32>
    %429 = vector.shape_cast %428 : vector<1x4x128xf32> to vector<4x128xf32>
    %430 = vector.shape_cast %427 : vector<4x128xf32> to vector<1x4x128xf32>
    tpu.vector_store %arg9[%c4_133, %c0_134, %c0_135], %430 {strides = array<i32>} : memref<8x4x128xf32, #tpu.memory_space<vmem>>, vector<1x4x128xf32>,
    %c5_136 = arith.constant 5 : index
    %c0_137 = arith.constant 0 : index
    %c0_138 = arith.constant 0 : index
    %431 = vector.load %arg15[%c5_136, %c0_137, %c0_138] : memref<8x8x128xf32, #tpu.memory_space<vmem>>, vector<1x8x128xf32>
    %432 = vector.shape_cast %431 : vector<1x8x128xf32> to vector<8x128xf32>
    %c2_139 = arith.constant 2 : index
    %c0_140 = arith.constant 0 : index
    %c0_141 = arith.constant 0 : index
    %433 = vector.load %arg15[%c2_139, %c0_140, %c0_141] : memref<8x8x128xf32, #tpu.memory_space<vmem>>, vector<1x8x128xf32>
    %434 = vector.shape_cast %433 : vector<1x8x128xf32> to vector<8x128xf32>
    %435 = vector.extract_strided_slice %432 {offsets = [0, 0], sizes = [4, 128], strides = [1, 1]} : vector<8x128xf32> to vector<4x128xf32>
    %436 = vector.extract_strided_slice %434 {offsets = [4, 0], sizes = [4, 128], strides = [1, 1]} : vector<8x128xf32> to vector<4x128xf32>
    %437 = arith.addf %435, %436 : vector<4x128xf32>
    %c5_142 = arith.constant 5 : index
    %c0_143 = arith.constant 0 : index
    %c0_144 = arith.constant 0 : index
    %438 = vector.load %arg9[%c5_142, %c0_143, %c0_144] : memref<8x4x128xf32, #tpu.memory_space<vmem>>, vector<1x4x128xf32>
    %439 = vector.shape_cast %438 : vector<1x4x128xf32> to vector<4x128xf32>
    %440 = vector.shape_cast %437 : vector<4x128xf32> to vector<1x4x128xf32>
    tpu.vector_store %arg9[%c5_142, %c0_143, %c0_144], %440 {strides = array<i32>} : memref<8x4x128xf32, #tpu.memory_space<vmem>>, vector<1x4x128xf32>,
    %c6_145 = arith.constant 6 : index
    %c0_146 = arith.constant 0 : index
    %c0_147 = arith.constant 0 : index
    %441 = vector.load %arg15[%c6_145, %c0_146, %c0_147] : memref<8x8x128xf32, #tpu.memory_space<vmem>>, vector<1x8x128xf32>
    %442 = vector.shape_cast %441 : vector<1x8x128xf32> to vector<8x128xf32>
    %c1_148 = arith.constant 1 : index
    %c0_149 = arith.constant 0 : index
    %c0_150 = arith.constant 0 : index
    %443 = vector.load %arg15[%c1_148, %c0_149, %c0_150] : memref<8x8x128xf32, #tpu.memory_space<vmem>>, vector<1x8x128xf32>
    %444 = vector.shape_cast %443 : vector<1x8x128xf32> to vector<8x128xf32>
    %445 = vector.extract_strided_slice %442 {offsets = [0, 0], sizes = [4, 128], strides = [1, 1]} : vector<8x128xf32> to vector<4x128xf32>
    %446 = vector.extract_strided_slice %444 {offsets = [4, 0], sizes = [4, 128], strides = [1, 1]} : vector<8x128xf32> to vector<4x128xf32>
    %447 = arith.addf %445, %446 : vector<4x128xf32>
    %c6_151 = arith.constant 6 : index
    %c0_152 = arith.constant 0 : index
    %c0_153 = arith.constant 0 : index
    %448 = vector.load %arg9[%c6_151, %c0_152, %c0_153] : memref<8x4x128xf32, #tpu.memory_space<vmem>>, vector<1x4x128xf32>
    %449 = vector.shape_cast %448 : vector<1x4x128xf32> to vector<4x128xf32>
    %450 = vector.shape_cast %447 : vector<4x128xf32> to vector<1x4x128xf32>
    tpu.vector_store %arg9[%c6_151, %c0_152, %c0_153], %450 {strides = array<i32>} : memref<8x4x128xf32, #tpu.memory_space<vmem>>, vector<1x4x128xf32>,
    %c7_154 = arith.constant 7 : index
    %c0_155 = arith.constant 0 : index
    %c0_156 = arith.constant 0 : index
    %451 = vector.load %arg15[%c7_154, %c0_155, %c0_156] : memref<8x8x128xf32, #tpu.memory_space<vmem>>, vector<1x8x128xf32>
    %452 = vector.shape_cast %451 : vector<1x8x128xf32> to vector<8x128xf32>
    %c0_157 = arith.constant 0 : index
    %c0_158 = arith.constant 0 : index
    %c0_159 = arith.constant 0 : index
    %453 = vector.load %arg15[%c0_157, %c0_158, %c0_159] : memref<8x8x128xf32, #tpu.memory_space<vmem>>, vector<1x8x128xf32>
    %454 = vector.shape_cast %453 : vector<1x8x128xf32> to vector<8x128xf32>
    %455 = vector.extract_strided_slice %452 {offsets = [0, 0], sizes = [4, 128], strides = [1, 1]} : vector<8x128xf32> to vector<4x128xf32>
    %456 = vector.extract_strided_slice %454 {offsets = [4, 0], sizes = [4, 128], strides = [1, 1]} : vector<8x128xf32> to vector<4x128xf32>
    %457 = arith.addf %455, %456 : vector<4x128xf32>
    %c7_160 = arith.constant 7 : index
    %c0_161 = arith.constant 0 : index
    %c0_162 = arith.constant 0 : index
    %458 = vector.load %arg9[%c7_160, %c0_161, %c0_162] : memref<8x4x128xf32, #tpu.memory_space<vmem>>, vector<1x4x128xf32>
    %459 = vector.shape_cast %458 : vector<1x4x128xf32> to vector<4x128xf32>
    %460 = vector.shape_cast %457 : vector<4x128xf32> to vector<1x4x128xf32>
    tpu.vector_store %arg9[%c7_160, %c0_161, %c0_162], %460 {strides = array<i32>} : memref<8x4x128xf32, #tpu.memory_space<vmem>>, vector<1x4x128xf32>,
    %461 = vector.extract_strided_slice %380 {offsets = [0, 0], sizes = [4, 128], strides = [1, 1]} : vector<8x256xf32> to vector<4x128xf32>
    %462 = vector.extract_strided_slice %380 {offsets = [4, 128], sizes = [4, 128], strides = [1, 1]} : vector<8x256xf32> to vector<4x128xf32>
    %c0_163 = arith.constant 0 : index
    %c0_164 = arith.constant 0 : index
    %c0_165 = arith.constant 0 : index
    %463 = vector.load %arg10[%c0_163, %c0_164, %c0_165] : memref<2x4x128xf32, #tpu.memory_space<vmem>>, vector<1x4x128xf32>
    %464 = vector.shape_cast %463 : vector<1x4x128xf32> to vector<4x128xf32>
    %465 = vector.shape_cast %461 : vector<4x128xf32> to vector<1x4x128xf32>
    tpu.vector_store %arg10[%c0_163, %c0_164, %c0_165], %465 {strides = array<i32>} : memref<2x4x128xf32, #tpu.memory_space<vmem>>, vector<1x4x128xf32>,
    %c1_166 = arith.constant 1 : index
    %c0_167 = arith.constant 0 : index
    %c0_168 = arith.constant 0 : index
    %466 = vector.load %arg10[%c1_166, %c0_167, %c0_168] : memref<2x4x128xf32, #tpu.memory_space<vmem>>, vector<1x4x128xf32>
    %467 = vector.shape_cast %466 : vector<1x4x128xf32> to vector<4x128xf32>
    %468 = vector.shape_cast %462 : vector<4x128xf32> to vector<1x4x128xf32>
    tpu.vector_store %arg10[%c1_166, %c0_167, %c0_168], %468 {strides = array<i32>} : memref<2x4x128xf32, #tpu.memory_space<vmem>>, vector<1x4x128xf32>,
    %c0_169 = arith.constant 0 : index
    %c0_170 = arith.constant 0 : index
    %469 = vector.load %arg6[%c0_169, %c0_170] : memref<128x256xf32, #tpu.memory_space<vmem>>, vector<128x256xf32>
    %cst_171 = arith.constant dense<0.000000e+00> : vector<4x256xf32>
    %470 = tpu.matmul %461, %469, %cst_171 {dimension_numbers = #tpu.dot_dimension_numbers<[1], [0], [0], [1], [0, 0, 1, 1], [], []>} : vector<4x128xf32>, vector<128x256xf32>, vector<4x256xf32> -> vector<4x256xf32>
    %c0_172 = arith.constant 0 : index
    %c0_173 = arith.constant 0 : index
    %471 = vector.load %arg7[%c0_172, %c0_173] : memref<1x256xf32, #tpu.memory_space<vmem>>, vector<1x256xf32>
    %472 = vector.broadcast %471 : vector<1x256xf32> to vector<4x256xf32>
    %473 = arith.addf %470, %472 : vector<4x256xf32>
    %cst_174 = arith.constant 0.000000e+00 : f32
    %474 = vector.broadcast %cst_174 : f32 to vector<4x256xf32>
    %475 = arith.cmpf oge, %473, %474 : vector<4x256xf32>
    %cst_175 = arith.constant 0.00999999977 : f32
    %476 = vector.broadcast %cst_175 : f32 to vector<4x256xf32>
    %477 = arith.mulf %476, %473 : vector<4x256xf32>
    %478 = arith.select %475, %473, %477 : vector<4x256xi1>, vector<4x256xf32>
    %479 = vector.extract_strided_slice %478 {offsets = [0, 0], sizes = [4, 128], strides = [1, 1]} : vector<4x256xf32> to vector<4x128xf32>
    %480 = vector.extract_strided_slice %478 {offsets = [0, 128], sizes = [4, 128], strides = [1, 1]} : vector<4x256xf32> to vector<4x128xf32>
    %c0_176 = arith.constant 0 : index
    %c0_177 = arith.constant 0 : index
    %481 = vector.load %arg12[%c0_176, %c0_177] : memref<4x128xf32, #tpu.memory_space<vmem>>, vector<4x128xf32>
    tpu.vector_store %arg12[%c0_176, %c0_177], %479 {strides = array<i32>} : memref<4x128xf32, #tpu.memory_space<vmem>>, vector<4x128xf32>,
    %c0_178 = arith.constant 0 : index
    %c0_179 = arith.constant 0 : index
    %482 = vector.load %arg13[%c0_178, %c0_179] : memref<4x128xf32, #tpu.memory_space<vmem>>, vector<4x128xf32>
    tpu.vector_store %arg13[%c0_178, %c0_179], %480 {strides = array<i32>} : memref<4x128xf32, #tpu.memory_space<vmem>>, vector<4x128xf32>,
    %c0_180 = arith.constant 0 : index
    %c0_181 = arith.constant 0 : index
    %483 = vector.load %arg8[%c0_180, %c0_181] : memref<4x128xf32, #tpu.memory_space<vmem>>, vector<4x128xf32>
    %cst_182 = arith.constant 5.000000e-01 : f32
    %484 = vector.broadcast %cst_182 : f32 to vector<4x128xf32>
    %485 = arith.mulf %484, %480 : vector<4x128xf32>
    %486 = math.exp %485 : vector<4x128xf32>
    %487 = arith.mulf %483, %486 : vector<4x128xf32>
    %488 = arith.addf %487, %479 : vector<4x128xf32>
    %c0_183 = arith.constant 0 : index
    %c0_184 = arith.constant 0 : index
    %489 = vector.load %arg11[%c0_183, %c0_184] : memref<4x128xf32, #tpu.memory_space<vmem>>, vector<4x128xf32>
    tpu.vector_store %arg11[%c0_183, %c0_184], %488 {strides = array<i32>} : memref<4x128xf32, #tpu.memory_space<vmem>>, vector<4x128xf32>,
    return
  }
}

</mosaic_0001>

<bundles_post_ra>
// kernel: text_encoder_forward.1
= control target key start
LH: loop header
LB: loop body
LE: loop exit
PB: predicated region body
PF: predicated region fallthrough
CT: control target
= control target key end

     0   :  { %19 = vsyncpa [#allocation5], 0  ;;  %s3343_s0 = inlined_call_operand.vmem [shape: f32[8,8,128], index: 0, kind: input, shape index: {}]   ;;  %s3344_s1 = inlined_call_operand.vmem [shape: f32[8,8,1], index: 1, kind: input, shape index: {}]   ;;  %s3345_s2 = inlined_call_operand.vmem [shape: f32[128,256], index: 2, kind: input, shape index: {}]   ;;  %s3346_s3 = inlined_call_operand.vmem [shape: f32[256,128], index: 3, kind: input, shape index: {}]   ;;  %s3347_s4 = inlined_call_operand.vmem [shape: f32[2,128], index: 4, kind: input, shape index: {}]   ;;  %s3348_s5 = inlined_call_operand.vmem [shape: f32[2,128], index: 5, kind: input, shape index: {}]   ;;  %s3349_s6 = inlined_call_operand.hbm [shape: f32[128,256], index: 6, kind: input, shape index: {}]   ;;  %s3350_s7 = inlined_call_operand.vmem [shape: f32[1,256], index: 7, kind: input, shape index: {}]   ;;  %s3351_s8 = inlined_call_operand.vmem [shape: f32[4,128], index: 8, kind: input, shape index: {}]   ;;  %s3352_s9 = inlined_call_operand.hbm [shape: f32[8,4,128], index: 9, kind: output, shape index: {0}]   ;;  %s3353_s10 = inlined_call_operand.hbm [shape: f32[2,4,128], index: 10, kind: output, shape index: {1}]   ;;  %s3354_s11 = inlined_call_operand.hbm [shape: f32[4,128], index: 11, kind: output, shape index: {2}]   ;;  %s3355_s12 = inlined_call_operand.hbm [shape: f32[4,128], index: 12, kind: output, shape index: {3}]   ;;  %s3356_s13 = inlined_call_operand.hbm [shape: f32[4,128], index: 13, kind: output, shape index: {4}]  }
   0x1   :  { %20 = vsyncpa [#allocation6], 0 }
   0x2   :  { %21 = vsyncpa [#allocation9], 0 }
   0x3   :  { %22 = vsyncpa [#allocation12], 0  ;;  %s2476_s25 = smov [#allocation4]   ;;  %s2336_s29 = scalar_lea.hbm %s3349_s6, 4096 }
   0x4   :  { %s40_s26 = sshll.u32 %s2476_s25, 4  ;;  %p2337_p0 = scmp.ne.s32.totalorder %s3349_s6, %s2336_s29  ;;  %s41_s26 = int_to_ptr.vmem [resolvable:$true] %s40_s26 }
   0x5   :  { %p2340_p1 = scmp.lt.u32.totalorder %s2336_s29, %s3349_s6 }
   0x7   :  { %p2342_p2 = pnand %p2340_p1, %p2337_p0 }
   0x9   :  { %2345 = shalt.err (!%p2342_p2)
}
   0xa   :  { %s2346_s17 = scalar_lea.vmem %s41_s26, 4096  ;;  %p2351_p4 = scmp.lt.s32.totalorder %s41_s26, %s41_s26 }
   0xb   :  { %p2347_p3 = scmp.ne.s32.totalorder %s41_s26, %s2346_s17  ;;  %p2352_p5 = scmp.lt.s32.totalorder %s2346_s17, %s2346_s17 }
   0xd   :  { %p2353_p6 = por %p2352_p5, %p2351_p4 }
   0xf   :  { %p2354_p7 = pnand %p2353_p6, %p2347_p3 }
  0x11   :  { %2357 = shalt.err (!%p2354_p7)
}
  0x12   :  { %s2477_s18 = smov 256   ;;  %s2478_s19 = smov 16  }
  0x13   :  { %46 = dma.hbm_to_vmem [thread:$0]  %s3349_s6, 4096, %s41_s26, [#allocation5], %s2477_s18, %s2477_s18, %s2478_s19  }
  0x14   :  { %2468 = dma.done.wait [#allocation5], 4096  }
  0x15   :  { %2469 = vsyncadd [#allocation5], 4294963200  ;;  %v2479_v0 = vmov 0.0   ;;  %v63_v1 = vld [vmem:[%s3345_s2 + $0x8] sm:$0xff]  ;;  %v65_v2 = vld [vmem:[%s3345_s2 + $0x18] sm:$0xff]  ;;  %s2481_s20 = smov 64  }
  0x16   :  { %158 = vmatprep.mubr.f32.mxu0 %v2479_v0  ;;  %357 = vmatprep.mubr.f32.mxu1 %v2479_v0  ;;  %v277_v3 = vld [vmem:[%s3346_s3 + $0x80] sm:$0xff]  ;;  %v1951_v4 = vpack.c.bf16 %v65_v2, %v63_v1  ;;  %v278_v5 = vld [vmem:[%s3346_s3 + $0x88] sm:$0xff]  ;;  %v64_v7 = vld [vmem:[%s3345_s2 + $0x10] sm:$0xff]  ;;  %s2482_s21 = smov 96  }
  0x17   :  { %v62_v6 = vld [vmem:[%s3345_s2] sm:$0xff]  ;;  %v2591_v8 = vpack.c.bf16 %v278_v5, %v277_v3  ;;  %v262_v11 = vld [vmem:[%s3346_s3 + $0x8] sm:$0xff]  ;;  %v69_v14 = vld [vmem:[%s3345_s2 + $0x38] sm:$0xff] }
  0x18   :  { %v1953_v9 = vpack.c.bf16 %v64_v7, %v62_v6  ;;  %v261_v10 = vld [vmem:[%s3346_s3] sm:$0xff]  ;;  %v67_v12 = vld [vmem:[%s3345_s2 + $0x28] sm:$0xff]  ;;  %1952 = vmatprep.subr.bf16.mxu0 %v1951_v4  ;;  %v279_v15 = vld [vmem:[%s3346_s3 + $0x90] sm:$0xff] }
  0x19   :  { %v2602_v13 = vpack.c.bf16 %v262_v11, %v261_v10  ;;  %v280_v16 = vld [vmem:[%s3346_s3 + $0x98] sm:$0xff]  ;;  %1984 = vmatprep.subr.bf16.mxu1 %v2591_v8  ;;  %v1955_v17 = vpack.c.bf16 %v69_v14, %v67_v12  ;;  %v66_v19 = vld [vmem:[%s3345_s2 + $0x20] sm:$0xff]  ;;  %v68_v20 = vld [vmem:[%s3345_s2 + $0x30] sm:$0xff] }
  0x1a   :  { %1954 = vmatpush1.bf16.msra.mxu0 %v1953_v9  ;;  %v2614_v18 = vpack.c.bf16 %v280_v16, %v279_v15  ;;  %v263_v21 = vld [vmem:[%s3346_s3 + $0x10] sm:$0xff]  ;;  %v1957_v22 = vpack.c.bf16 %v68_v20, %v66_v19  ;;  %v264_v23 = vld [vmem:[%s3346_s3 + $0x18] sm:$0xff]  ;;  %v71_v24 = vld [vmem:[%s3345_s2 + $0x48] sm:$0xff] }
  0x1b   :  { %1986 = vmatpush3.bf16.msra.mxu1 %v2602_v13  ;;  %v73_v25 = vld [vmem:[%s3345_s2 + $0x58] sm:$0xff]  ;;  %1956 = vmatprep.subr.bf16.mxu0 %v1955_v17  ;;  %v2636_v26 = vpack.c.bf16 %v264_v23, %v263_v21  ;;  %v281_v28 = vld [vmem:[%s3346_s3 + $0xa0] sm:$0xff]  ;;  %v282_v29 = vld [vmem:[%s3346_s3 + $0xa8] sm:$0xff] }
  0x1c   :  { %1988 = vmatprep.subr.bf16.mxu1 %v2614_v18  ;;  %v1959_v27 = vpack.c.bf16 %v73_v25, %v71_v24  ;;  %v70_v30 = vld [vmem:[%s3345_s2 + $0x40] sm:$0xff]  ;;  %v2647_v31 = vpack.c.bf16 %v282_v29, %v281_v28  ;;  %v72_v32 = vld [vmem:[%s3345_s2 + $0x50] sm:$0xff]  ;;  %v266_v34 = vld [vmem:[%s3346_s3 + $0x28] sm:$0xff] }
  0x1d   :  { %v265_v33 = vld [vmem:[%s3346_s3 + $0x20] sm:$0xff]  ;;  %v1961_v35 = vpack.c.bf16 %v72_v32, %v70_v30  ;;  %v75_v36 = vld [vmem:[%s3345_s2 + $0x68] sm:$0xff]  ;;  %v77_v37 = vld [vmem:[%s3345_s2 + $0x78] sm:$0xff] }
  0x1e   :  { %1958 = vmatpush1.bf16.msra.mxu0 %v1957_v22  ;;  %v283_v38 = vld [vmem:[%s3346_s3 + $0xb0] sm:$0xff]  ;;  %v2668_v39 = vpack.c.bf16 %v266_v34, %v265_v33  ;;  %v1963_v40 = vpack.c.bf16 %v77_v37, %v75_v36  ;;  %v284_v41 = vld [vmem:[%s3346_s3 + $0xb8] sm:$0xff]  ;;  %v74_v42 = vld [vmem:[%s3345_s2 + $0x60] sm:$0xff] }
  0x1f   :  { %1990 = vmatpush3.bf16.msra.mxu1 %v2636_v26  ;;  %1960 = vmatprep.subr.bf16.mxu0 %v1959_v27  ;;  %v76_v43 = vld [vmem:[%s3345_s2 + $0x70] sm:$0xff]  ;;  %v2680_v44 = vpack.c.bf16 %v284_v41, %v283_v38  ;;  %v268_v46 = vld [vmem:[%s3346_s3 + $0x38] sm:$0xff]  ;;  %v79_v47 = vld [vmem:[%s3345_s2 + $0x88] sm:$0xff]  ;;  %v2480_v41 = vmov 0  }
  0x20   :  { %1992 = vmatprep.subr.bf16.mxu1 %v2647_v31  ;;  %v267_v45 = vld [vmem:[%s3346_s3 + $0x30] sm:$0xff]  ;;  %v81_v48 = vld [vmem:[%s3345_s2 + $0x98] sm:$0xff]  ;;  %v285_v49 = vld [vmem:[%s3346_s3 + $0xc0] sm:$0xff]  ;;  %v1965_v51 = vpack.c.bf16 %v76_v43, %v74_v42  ;;  %2284 = vset.pattern.permute.xlu0 %v2480_v41  ;;  %v207_v43 = vlaneseq }
  0x21   :  { %v286_v50 = vld [vmem:[%s3346_s3 + $0xc8] sm:$0xff]  ;;  %v2701_v52 = vpack.c.bf16 %v268_v46, %v267_v45  ;;  %v1967_v53 = vpack.c.bf16 %v81_v48, %v79_v47  ;;  %v78_v54 = vld [vmem:[%s3345_s2 + $0x80] sm:$0xff]  ;;  %v80_v55 = vld [vmem:[%s3345_s2 + $0x90] sm:$0xff]  ;;  %2285 = vset.pattern.permute.xlu1 %v2480_v41 }
  0x22   :  { %1962 = vmatpush1.bf16.msra.mxu0 %v1961_v35  ;;  %v269_v56 = vld [vmem:[%s3346_s3 + $0x40] sm:$0xff]  ;;  %v2713_v57 = vpack.c.bf16 %v286_v50, %v285_v49  ;;  %v270_v58 = vld [vmem:[%s3346_s3 + $0x48] sm:$0xff]  ;;  %v85_v60 = vld [vmem:[%s3345_s2 + $0xb8] sm:$0xff]  ;;  %v1969_v63 = vpack.c.bf16 %v80_v55, %v78_v54  ;;  %v2856_v45 = vshrl.u32 %v207_v43, 7 }
  0x23   :  { %1994 = vmatpush3.bf16.msra.mxu1 %v2668_v39  ;;  %1964 = vmatprep.subr.bf16.mxu0 %v1963_v40  ;;  %v83_v59 = vld [vmem:[%s3345_s2 + $0xa8] sm:$0xff]  ;;  %v287_v61 = vld [vmem:[%s3346_s3 + $0xd0] sm:$0xff]  ;;  %v288_v62 = vld [vmem:[%s3346_s3 + $0xd8] sm:$0xff]  ;;  %v2731_v1 = vpack.c.bf16 %v270_v58, %v269_v56 }
  0x24   :  { %1996 = vmatprep.subr.bf16.mxu1 %v2680_v44  ;;  %v1971_v2 = vpack.c.bf16 %v85_v60, %v83_v59  ;;  %v82_v3 = vld [vmem:[%s3345_s2 + $0xa0] sm:$0xff]  ;;  %v84_v4 = vld [vmem:[%s3345_s2 + $0xb0] sm:$0xff]  ;;  %v2743_v6 = vpack.c.bf16 %v288_v62, %v287_v61  ;;  %v272_v7 = vld [vmem:[%s3346_s3 + $0x58] sm:$0xff]  ;;  %vm209_vm0 = vcmp.lt.s32.totalorder %v2856_v45, 4 }
  0x25   :  { %v271_v5 = vld [vmem:[%s3346_s3 + $0x50] sm:$0xff]  ;;  %v87_v9 = vld [vmem:[%s3345_s2 + $0xc8] sm:$0xff]  ;;  %v89_v10 = vld [vmem:[%s3345_s2 + $0xd8] sm:$0xff]  ;;  %v1973_v14 = vpack.c.bf16 %v84_v4, %v82_v3 }
  0x26   :  { %1966 = vmatpush1.bf16.msra.mxu0 %v1965_v51  ;;  %v289_v11 = vld [vmem:[%s3346_s3 + $0xe0] sm:$0xff]  ;;  %v290_v12 = vld [vmem:[%s3346_s3 + $0xe8] sm:$0xff]  ;;  %v2761_v15 = vpack.c.bf16 %v272_v7, %v271_v5  ;;  %v1975_v16 = vpack.c.bf16 %v89_v10, %v87_v9  ;;  %v88_v19 = vld [vmem:[%s3345_s2 + $0xd0] sm:$0xff] }
  0x27   :  { %1998 = vmatpush3.bf16.msra.mxu1 %v2701_v52  ;;  %1968 = vmatprep.subr.bf16.mxu0 %v1967_v53  ;;  %v86_v17 = vld [vmem:[%s3345_s2 + $0xc0] sm:$0xff]  ;;  %v2773_v21 = vpack.c.bf16 %v290_v12, %v289_v11  ;;  %v274_v22 = vld [vmem:[%s3346_s3 + $0x68] sm:$0xff]  ;;  %v93_v24 = vld [vmem:[%s3345_s2 + $0xf8] sm:$0xff] }
  0x28   :  { %2000 = vmatprep.subr.bf16.mxu1 %v2713_v57  ;;  %v273_v20 = vld [vmem:[%s3346_s3 + $0x60] sm:$0xff]  ;;  %v91_v23 = vld [vmem:[%s3345_s2 + $0xe8] sm:$0xff]  ;;  %v291_v25 = vld [vmem:[%s3346_s3 + $0xf0] sm:$0xff]  ;;  %v1977_v28 = vpack.c.bf16 %v88_v19, %v86_v17 }
  0x29   :  { %v292_v27 = vld [vmem:[%s3346_s3 + $0xf8] sm:$0xff]  ;;  %v2791_v29 = vpack.c.bf16 %v274_v22, %v273_v20  ;;  %v1979_v30 = vpack.c.bf16 %v93_v24, %v91_v23  ;;  %v90_v32 = vld [vmem:[%s3345_s2 + $0xe0] sm:$0xff]  ;;  %v92_v33 = vld [vmem:[%s3345_s2 + $0xf0] sm:$0xff] }
  0x2a   :  { %1970 = vmatpush1.bf16.msra.mxu0 %v1969_v63  ;;  %v2800_v34 = vpack.c.bf16 %v292_v27, %v291_v25  ;;  %v275_v35 = vld [vmem:[%s3346_s3 + $0x70] sm:$0xff]  ;;  %v276_v36 = vld [vmem:[%s3346_s3 + $0x78] sm:$0xff]  ;;  %v1981_v37 = vpack.c.bf16 %v92_v33, %v90_v32  ;;  %v54_v40 = vld [vmem:[%s3343_s0] sm:$0xff]  ;;  %v2916_v27 = vsel %vm209_vm0, 1.0, %v2479_v0 }
  0x2b   :  { %2002 = vmatpush3.bf16.msra.mxu1 %v2731_v1  ;;  %1972 = vmatprep.subr.bf16.mxu0 %v1971_v2  ;;  %v2809_v38 = vpack.c.bf16 %v276_v36, %v275_v35  ;;  %v55_v42 = vld [vmem:[%s3343_s0 + $0x8] sm:$0xff]  ;;  %v1651_v46 = vld [vmem:[%s3347_s4] ss:$0 sm:$0xff]  ;;  %v56_v61 = vld [vmem:[%s3343_s0 + $0x10] sm:$0xff]  ;;  %v2919_v33 = vsub.f32 1.0, %v2916_v27 }
  0x2c   :  { %2004 = vmatprep.subr.bf16.mxu1 %v2743_v6  ;;  %v57_v62 = vld [vmem:[%s3343_s0 + $0x18] sm:$0xff]  ;;  %v58_v63 = vld [vmem:[%s3343_s0 + $0x20] sm:$0xff]  ;;  %v59_v2 = vld [vmem:[%s3343_s0 + $0x28] sm:$0xff] }
  0x2d   :  { %v384_v4 = vld [vmem:[%s3344_s1] sm:$0xff]  ;;  %v60_v5 = vld [vmem:[%s3343_s0 + $0x30] sm:$0xff]  ;;  %v61_v7 = vld [vmem:[%s3343_s0 + $0x38] sm:$0xff] }
  0x2e   :  { %1974 = vmatpush1.bf16.msra.mxu0 %v1973_v14  ;;  %v1653_v12 = vld [vmem:[%s3348_s5] ss:$0 sm:$0xff]  ;;  %v1654_v14 = vld [vmem:[%s3348_s5 + $0x1] ss:$0 sm:$0xff] }
  0x2f   :  { %2006 = vmatpush3.bf16.msra.mxu1 %v2761_v15  ;;  %1976 = vmatprep.subr.bf16.mxu0 %v1975_v16  ;;  %v2910_v16 = vsel %vm209_vm0, %v1653_v12, %v1654_v14  ;;  %v1660_v14 = vld [vmem:[%s3344_s1 + $0x10] sm:$0xff] }
  0x30   :  { %2008 = vmatprep.subr.bf16.mxu1 %v2773_v21 }
  0x32   :  { %1978 = vmatpush1.bf16.msra.mxu0 %v1977_v28 }
  0x33   :  { %2010 = vmatpush3.bf16.msra.mxu1 %v2791_v29  ;;  %1980 = vmatprep.subr.bf16.mxu0 %v1979_v30 }
  0x34   :  { %2012 = vmatprep.subr.bf16.mxu1 %v2800_v34 }
  0x36   :  { %1982 = vmatpush1.bf16.msra.mxu0 %v1981_v37 }
  0x37   :  { %2014 = vmatpush3.bf16.msra.mxu1 %v2809_v38  ;;  %2016 = vmatprep.subr.bf16.mxu0 %v2591_v8 }
  0x38   :  { %2048 = vmatprep.subr.bf16.mxu1 %v2591_v8 }
  0x39   :  { %159 = vmatmul.mubr.f32.vlgmr.msra.gmra.mrb[0].mxu0 %v54_v40 }
  0x3a   :  { %358 = vmatmul.mubr.f32.vlgmr.msra.gmra.mrb[0].mxu1 %v2479_v0  ;;  %2018 = vmatpush3.bf16.msra.mxu0 %v2602_v13 }
  0x3b   :  { %164 = vmatprep.mubr.f32.mxu0 %v2479_v0  ;;  %2020 = vmatprep.subr.bf16.mxu0 %v2614_v18 }
  0x3c   :  { %2050 = vmatpush3.bf16.msra.mxu1 %v2602_v13 }
  0x3d   :  { %2052 = vmatprep.subr.bf16.mxu1 %v2614_v18  ;;  %165 = vmatmul.mubr.f32.gmra.mrb[2].mxu0 %v55_v42 }
  0x3e   :  { %2022 = vmatpush3.bf16.msra.mxu0 %v2636_v26  ;;  %170 = vmatprep.mubr.f32.mxu0 %v2479_v0 }
  0x3f   :  { %2024 = vmatprep.subr.bf16.mxu0 %v2647_v31 }
  0x40   :  { %2054 = vmatpush3.bf16.msra.mxu1 %v2636_v26 }
  0x41   :  { %2056 = vmatprep.subr.bf16.mxu1 %v2647_v31  ;;  %171 = vmatmul.mubr.f32.gmra.mrb[4].mxu0 %v56_v61 }
  0x42   :  { %2026 = vmatpush3.bf16.msra.mxu0 %v2668_v39  ;;  %176 = vmatprep.mubr.f32.mxu0 %v2479_v0 }
  0x43   :  { %2028 = vmatprep.subr.bf16.mxu0 %v2680_v44 }
  0x44   :  { %2058 = vmatpush3.bf16.msra.mxu1 %v2668_v39 }
  0x45   :  { %2060 = vmatprep.subr.bf16.mxu1 %v2680_v44  ;;  %177 = vmatmul.mubr.f32.gmra.mrb[6].mxu0 %v57_v62 }
  0x46   :  { %2030 = vmatpush3.bf16.msra.mxu0 %v2701_v52  ;;  %182 = vmatprep.mubr.f32.mxu0 %v2479_v0 }
  0x47   :  { %2032 = vmatprep.subr.bf16.mxu0 %v2713_v57 }
  0x48   :  { %2062 = vmatpush3.bf16.msra.mxu1 %v2701_v52 }
  0x49   :  { %2064 = vmatprep.subr.bf16.mxu1 %v2713_v57  ;;  %183 = vmatmul.mubr.f32.gmra.mrb[8].mxu0 %v58_v63 }
  0x4a   :  { %2034 = vmatpush3.bf16.msra.mxu0 %v2731_v1  ;;  %188 = vmatprep.mubr.f32.mxu0 %v2479_v0 }
  0x4b   :  { %2036 = vmatprep.subr.bf16.mxu0 %v2743_v6 }
  0x4c   :  { %2066 = vmatpush3.bf16.msra.mxu1 %v2731_v1 }
  0x4d   :  { %2068 = vmatprep.subr.bf16.mxu1 %v2743_v6  ;;  %189 = vmatmul.mubr.f32.gmra.mrb[10].mxu0 %v59_v2 }
  0x4e   :  { %2038 = vmatpush3.bf16.msra.mxu0 %v2761_v15  ;;  %194 = vmatprep.mubr.f32.mxu0 %v2479_v0 }
  0x4f   :  { %2040 = vmatprep.subr.bf16.mxu0 %v2773_v21 }
  0x50   :  { %2070 = vmatpush3.bf16.msra.mxu1 %v2761_v15 }
  0x51   :  { %2072 = vmatprep.subr.bf16.mxu1 %v2773_v21  ;;  %195 = vmatmul.mubr.f32.gmra.mrb[12].mxu0 %v60_v5 }
  0x52   :  { %2042 = vmatpush3.bf16.msra.mxu0 %v2791_v29  ;;  %200 = vmatprep.mubr.f32.mxu0 %v2479_v0 }
  0x53   :  { %2044 = vmatprep.subr.bf16.mxu0 %v2800_v34 }
  0x54   :  { %2074 = vmatpush3.bf16.msra.mxu1 %v2791_v29 }
  0x55   :  { %2076 = vmatprep.subr.bf16.mxu1 %v2800_v34  ;;  %201 = vmatmul.mubr.f32.gmra.mrb[14].mxu0 %v61_v7 }
  0x56   :  { %2046 = vmatpush3.bf16.msra.mxu0 %v2809_v38 }
  0x57   :  { %2080 = vmatprep.subr.bf16.mxu0 %v2591_v8 }
  0x58   :  { %2078 = vmatpush3.bf16.msra.mxu1 %v2809_v38 }
  0x59   :  { %2112 = vmatprep.subr.bf16.mxu1 %v2591_v8  ;;  %v1652_v8 = vld [vmem:[%s3347_s4 + $0x1] ss:$0 sm:$0xff] }
  0x5a   :  { %v2867_v48 = vsel %vm209_vm0, %v1651_v46, %v1652_v8 }
 0x10c   :  { %v160_v47 = vpop.f32.mrb[0].mxu0 }
 0x10d   :  { %v1703_v49 = vpop.f32.mrb[0].mxu1  ;;  %v162_v50 = vpop.f32.mrb[1].mxu0 }
 0x10e   :  { %v236_v51 = vsel %vm209_vm0, %v160_v47, %v162_v50  ;;  %v1704_v53 = vpop.f32.mrb[1].mxu1 }
 0x10f   :  { %v244_v54 = vadd.f32 %v236_v51, %v2867_v48  ;;  %v1705_v55 = vadd.f32 %v1704_v53, %v1703_v49 }
 0x110   :  { %v166_v9 = vpop.f32.mrb[2].mxu0 }
 0x111   :  { %v363_v56 = vadd.f32 %v1705_v55, %v244_v54  ;;  %v168_v10 = vpop.f32.mrb[3].mxu0  ;;  %v377_v17 = vadd.f32 %v1705_v55, %v2910_v16 }
 0x112   :  { %v237_v11 = vsel %vm209_vm0, %v166_v9, %v168_v10 }
 0x113   :  { %v1656_v58 = vmul.f32 -1.442695, %v363_v56 }
 0x114   :  { %v172_v41 = vpop.f32.mrb[4].mxu0 }
 0x115   :  { %2286 = vpow2.f32 %v1656_v58  ;;  %v174_v42 = vpop.f32.mrb[5].mxu0 }
 0x116   :  { %v2946_v43 = vsel %vm209_vm0, %v172_v41, %v174_v42 }
 0x118   :  { %v178_v46 = vpop.f32.mrb[6].mxu0 }
 0x119   :  { %v180_v8 = vpop.f32.mrb[7].mxu0 }
 0x11a   :  { %v2950_v47 = vsel %vm209_vm0, %v178_v46, %v180_v8 }
 0x11c   :  { %v184_v49 = vpop.f32.mrb[8].mxu0 }
 0x11d   :  { %v186_v50 = vpop.f32.mrb[9].mxu0 }
 0x11e   :  { %v2954_v51 = vsel %vm209_vm0, %v184_v49, %v186_v50 }
 0x11f   :  { %v2287_v59 = vpop.eup %2286 }
 0x120   :  { %v367_v60 = vadd.f32 1.0, %v2287_v59  ;;  %v190_v53 = vpop.f32.mrb[10].mxu0 }
 0x122   :  { %2288 = vrcp.f32 %v367_v60 }
 0x12c   :  { %v2289_v3 = vpop.eup %2288 }
 0x12d   :  { %374 = vrot.lane.b32.xlu1 %v2289_v3, %s2481_s20  ;;  %371 = vrot.lane.b32.xlu0 %v2289_v3, %s2482_s21  ;;  %v245_v3 = vadd.f32 %v237_v11, %v2867_v48  ;;  %v1658_v11 = vld [vmem:[%s3344_s1 + $0x8] sm:$0xff] }
 0x131   :  { %387 = vperm.xlu0 %2284, %v384_v4  }
 0x19f   :  { %v372_v19 = vpop.permute.xlu0 %371  ;;  %v375_v25 = vpop.permute.xlu1 %374 }
 0x1a0   :  { %v378_v20 = vmul.f32 %v377_v17, %v372_v19 }
 0x1a2   :  { %v379_v22 = vadd.f32 %v378_v20, %v244_v54  ;;  %v192_v54 = vpop.f32.mrb[11].mxu0 }
 0x1a3   :  { %v2958_v55 = vsel %vm209_vm0, %v190_v53, %v192_v54  ;;  %v196_v56 = vpop.f32.mrb[12].mxu0 }
 0x1a4   :  { %2290 = vtanh.f32 %v379_v22  ;;  %v198_v58 = vpop.f32.mrb[13].mxu0 }
 0x1a5   :  { %v2962_v59 = vsel %vm209_vm0, %v196_v56, %v198_v58  ;;  %v202_v60 = vpop.f32.mrb[14].mxu0 }
 0x1a6   :  { %v204_v61 = vpop.f32.mrb[15].mxu0 }
 0x1a7   :  { %v2966_v62 = vsel %vm209_vm0, %v202_v60, %v204_v61 }
 0x1ae   :  { %v2291_v23 = vpop.eup %2290 }
 0x1af   :  { %v381_v24 = vsub.f32 0.0, %v2291_v23 }
 0x1b0   :  { %v388_v30 = vpop.permute.xlu0 %387 }
 0x1b1   :  { %v382_v28 = vmul.f32 %v381_v24, %v375_v25 }
 0x1b3   :  { %v383_v32 = vadd.f32 %v2291_v23, %v382_v28 }
 0x1b5   :  { %v2921_v35 = vmul.f32 %v388_v30, %v383_v32 }
 0x1b7   :  { %v393_v36 = vmul.f32 %v2916_v27, %v2921_v35  ;;  %v394_v37 = vmul.f32 %v2921_v35, %v2919_v33 }
 0x1b9   :  { %493 = vmatprep.mubr.f32.mxu0 %v394_v37  ;;  %v2927_v40 = vadd.f32 %v394_v37, %v393_v36 }
 0x1ba   :  { %494 = vmatmul.mubr.f32.vlgmr.msra.gmra.mrb[16].mxu0 %v393_v36 }
 0x1bb   :  { %2082 = vmatpush3.bf16.msra.mxu0 %v2602_v13 }
 0x1bc   :  { %2084 = vmatprep.subr.bf16.mxu0 %v2614_v18 }
 0x1bf   :  { %2086 = vmatpush3.bf16.msra.mxu0 %v2636_v26 }
 0x1c0   :  { %2088 = vmatprep.subr.bf16.mxu0 %v2647_v31 }
 0x1c3   :  { %2090 = vmatpush3.bf16.msra.mxu0 %v2668_v39 }
 0x1c4   :  { %2092 = vmatprep.subr.bf16.mxu0 %v2680_v44 }
 0x1c7   :  { %2094 = vmatpush3.bf16.msra.mxu0 %v2701_v52 }
 0x1c8   :  { %2096 = vmatprep.subr.bf16.mxu0 %v2713_v57 }
 0x1cb   :  { %2098 = vmatpush3.bf16.msra.mxu0 %v2731_v1 }
 0x1cc   :  { %2100 = vmatprep.subr.bf16.mxu0 %v2743_v6 }
 0x1cf   :  { %2102 = vmatpush3.bf16.msra.mxu0 %v2761_v15 }
 0x1d0   :  { %2104 = vmatprep.subr.bf16.mxu0 %v2773_v21 }
 0x1d3   :  { %2106 = vmatpush3.bf16.msra.mxu0 %v2791_v29 }
 0x1d4   :  { %2108 = vmatprep.subr.bf16.mxu0 %v2800_v34 }
 0x1d7   :  { %2110 = vmatpush3.bf16.msra.mxu0 %v2809_v38 }
 0x28d   :  { %v1738_v63 = vpop.f32.mrb[16].mxu0 }
 0x28e   :  { %v1739_v2 = vpop.f32.mrb[17].mxu0 }
 0x28f   :  { %v1740_v4 = vadd.f32 %v1739_v2, %v1738_v63 }
 0x291   :  { %v499_v5 = vadd.f32 %v1740_v4, %v245_v3  ;;  %v513_v17 = vadd.f32 %v1740_v4, %v2910_v16  ;;  %v247_v4 = vadd.f32 %v2950_v47, %v2867_v48 }
 0x293   :  { %v1657_v7 = vmul.f32 -1.442695, %v499_v5 }
 0x295   :  { %2292 = vpow2.f32 %v1657_v7 }
 0x29f   :  { %v2293_v9 = vpop.eup %2292 }
 0x2a0   :  { %v503_v10 = vadd.f32 1.0, %v2293_v9 }
 0x2a2   :  { %2294 = vrcp.f32 %v503_v10 }
 0x2ac   :  { %v2295_v12 = vpop.eup %2294 }
 0x2ad   :  { %510 = vrot.lane.b32.xlu0 %v2295_v12, %s2481_s20  ;;  %507 = vrot.lane.b32.xlu1 %v2295_v12, %s2482_s21 }
 0x2b1   :  { %666 = vperm.xlu0 %2284, %v1660_v14   ;;  %525 = vperm.xlu1 %2285, %v1658_v11   ;;  %v1664_v11 = vld [vmem:[%s3344_s1 + $0x20] sm:$0xff] }
 0x31f   :  { %v508_v19 = vpop.permute.xlu1 %507  ;;  %v511_v25 = vpop.permute.xlu0 %510 }
 0x320   :  { %v514_v20 = vmul.f32 %v513_v17, %v508_v19 }
 0x322   :  { %v515_v22 = vadd.f32 %v514_v20, %v245_v3 }
 0x324   :  { %2296 = vtanh.f32 %v515_v22 }
 0x32e   :  { %v2297_v23 = vpop.eup %2296 }
 0x32f   :  { %v518_v24 = vsub.f32 %v2927_v40, %v2297_v23 }
 0x330   :  { %v2983_v36 = vpop.permute.xlu1 %525  ;;  %v3015_v54 = vpop.permute.xlu0 %666 }
 0x331   :  { %v519_v28 = vmul.f32 %v518_v24, %v511_v25 }
 0x333   :  { %v2979_v30 = vadd.f32 %v2297_v23, %v519_v28 }
 0x335   :  { %v531_v32 = vsub.f32 %v2979_v30, %v2927_v40 }
 0x337   :  { %v532_v37 = vmul.f32 %v531_v32, %v2983_v36 }
 0x339   :  { %v533_v41 = vadd.f32 %v532_v37, %v2927_v40 }
 0x33b   :  { %v534_v42 = vmul.f32 %v2916_v27, %v533_v41  ;;  %v535_v46 = vmul.f32 %v533_v41, %v2919_v33 }
 0x33d   :  { %634 = vmatprep.mubr.f32.mxu1 %v535_v46  ;;  %v658_v8 = vadd.f32 %v535_v46, %v534_v42 }
 0x33e   :  { %635 = vmatmul.mubr.f32.vlgmr.msra.gmra.mrb[2].mxu1 %v534_v42 }
 0x33f   :  { %2114 = vmatpush3.bf16.msra.mxu1 %v2602_v13 }
 0x340   :  { %2116 = vmatprep.subr.bf16.mxu1 %v2614_v18 }
 0x343   :  { %2118 = vmatpush3.bf16.msra.mxu1 %v2636_v26  ;;  %v246_v26 = vadd.f32 %v2946_v43, %v2867_v48 }
 0x344   :  { %2120 = vmatprep.subr.bf16.mxu1 %v2647_v31 }
 0x347   :  { %2122 = vmatpush3.bf16.msra.mxu1 %v2668_v39 }
 0x348   :  { %2124 = vmatprep.subr.bf16.mxu1 %v2680_v44 }
 0x34b   :  { %2126 = vmatpush3.bf16.msra.mxu1 %v2701_v52 }
 0x34c   :  { %2128 = vmatprep.subr.bf16.mxu1 %v2713_v57 }
 0x34f   :  { %2130 = vmatpush3.bf16.msra.mxu1 %v2731_v1 }
 0x350   :  { %2132 = vmatprep.subr.bf16.mxu1 %v2743_v6  ;;  %v1662_v6 = vld [vmem:[%s3344_s1 + $0x18] sm:$0xff] }
 0x353   :  { %2134 = vmatpush3.bf16.msra.mxu1 %v2761_v15 }
 0x354   :  { %2136 = vmatprep.subr.bf16.mxu1 %v2773_v21 }
 0x357   :  { %2138 = vmatpush3.bf16.msra.mxu1 %v2791_v29 }
 0x358   :  { %2140 = vmatprep.subr.bf16.mxu1 %v2800_v34 }
 0x35b   :  { %2142 = vmatpush3.bf16.msra.mxu1 %v2809_v38 }
 0x411   :  { %v1773_v13 = vpop.f32.mrb[2].mxu1 }
 0x412   :  { %v1774_v18 = vpop.f32.mrb[3].mxu1 }
 0x413   :  { %v1775_v31 = vadd.f32 %v1774_v18, %v1773_v13  ;;  %v977_v18 = vld [vmem:[%s3346_s3 + $0x80] sm:$0xff] }
 0x415   :  { %v640_v39 = vadd.f32 %v1775_v31, %v246_v26  ;;  %v654_v15 = vadd.f32 %v1775_v31, %v2910_v16  ;;  %v961_v31 = vld [vmem:[%s3346_s3] sm:$0xff] }
 0x417   :  { %v1659_v44 = vmul.f32 -1.442695, %v640_v39 }
 0x419   :  { %2298 = vpow2.f32 %v1659_v44  ;;  %v962_v44 = vld [vmem:[%s3346_s3 + $0x8] sm:$0xff] }
 0x423   :  { %v2299_v52 = vpop.eup %2298 }
 0x424   :  { %v644_v57 = vadd.f32 1.0, %v2299_v52  ;;  %v3052_v52 = vpack.c.bf16 %v962_v44, %v961_v31  ;;  %v973_v31 = vld [vmem:[%s3346_s3 + $0x60] sm:$0xff]  ;;  %v974_v44 = vld [vmem:[%s3346_s3 + $0x68] sm:$0xff] }
 0x426   :  { %2300 = vrcp.f32 %v644_v57 }
 0x430   :  { %v2301_v1 = vpop.eup %2300 }
 0x431   :  { %648 = vrot.lane.b32.xlu1 %v2301_v1, %s2482_s21 }
 0x435   :  { %651 = vrot.lane.b32.xlu1 %v2301_v1, %s2481_s20 }
 0x439   :  { %807 = vperm.xlu1 %2285, %v1662_v6   ;;  %v3060_v6 = vadd.f32 %v2954_v51, %v2867_v48  ;;  %v963_v51 = vld [vmem:[%s3346_s3 + $0x10] sm:$0xff] }
 0x4a3   :  { %v649_v21 = vpop.permute.xlu1 %648 }
 0x4a4   :  { %v655_v29 = vmul.f32 %v654_v15, %v649_v21 }
 0x4a6   :  { %v656_v34 = vadd.f32 %v655_v29, %v246_v26  ;;  %v978_v26 = vld [vmem:[%s3346_s3 + $0x88] sm:$0xff] }
 0x4a7   :  { %v652_v43 = vpop.permute.xlu1 %651  ;;  %v3047_v39 = vpack.c.bf16 %v978_v26, %v977_v18  ;;  %v990_v18 = vld [vmem:[%s3346_s3 + $0xe8] sm:$0xff] }
 0x4a8   :  { %2302 = vtanh.f32 %v656_v34 }
 0x4a9   :  { %2144 = vmatprep.subr.bf16.mxu0 %v3047_v39  ;;  %2176 = vmatprep.subr.bf16.mxu1 %v3047_v39 }
 0x4b2   :  { %v2303_v38 = vpop.eup %2302 }
 0x4b3   :  { %v659_v40 = vsub.f32 %v658_v8, %v2303_v38 }
 0x4b5   :  { %v660_v49 = vmul.f32 %v659_v40, %v652_v43  ;;  %v979_v40 = vld [vmem:[%s3346_s3 + $0x90] sm:$0xff]  ;;  %v980_v43 = vld [vmem:[%s3346_s3 + $0x98] sm:$0xff] }
 0x4b7   :  { %v3012_v50 = vadd.f32 %v2303_v38, %v660_v49  ;;  %v3072_v49 = vpack.c.bf16 %v980_v43, %v979_v40 }
 0x4b8   :  { %v3031_v37 = vpop.permute.xlu1 %807 }
 0x4b9   :  { %v672_v53 = vsub.f32 %v3012_v50, %v658_v8 }
 0x4bb   :  { %v673_v56 = vmul.f32 %v672_v53, %v3015_v54  ;;  %v964_v53 = vld [vmem:[%s3346_s3 + $0x18] sm:$0xff] }
 0x4bd   :  { %v674_v58 = vadd.f32 %v673_v56, %v658_v8  ;;  %v3080_v56 = vpack.c.bf16 %v964_v53, %v963_v51 }
 0x4bf   :  { %v675_v60 = vmul.f32 %v2916_v27, %v674_v58  ;;  %v676_v61 = vmul.f32 %v674_v58, %v2919_v33  ;;  %v981_v58 = vld [vmem:[%s3346_s3 + $0xa0] sm:$0xff] }
 0x4c1   :  { %775 = vmatprep.mubr.f32.mxu0 %v676_v61  ;;  %v799_v63 = vadd.f32 %v676_v61, %v675_v60 }
 0x4c2   :  { %776 = vmatmul.mubr.f32.vlgmr.msra.gmra.mrb[18].mxu0 %v675_v60  ;;  %v982_v60 = vld [vmem:[%s3346_s3 + $0xa8] sm:$0xff] }
 0x4c3   :  { %2146 = vmatpush3.bf16.msra.mxu0 %v3052_v52  ;;  %v3092_v61 = vpack.c.bf16 %v982_v60, %v981_v58 }
 0x4c4   :  { %2148 = vmatprep.subr.bf16.mxu0 %v3072_v49 }
 0x4c7   :  { %2150 = vmatpush3.bf16.msra.mxu0 %v3080_v56 }
 0x4c8   :  { %2152 = vmatprep.subr.bf16.mxu0 %v3092_v61 }
 0x595   :  { %v1808_v2 = vpop.f32.mrb[18].mxu0 }
 0x596   :  { %v1809_v3 = vpop.f32.mrb[19].mxu0 }
 0x597   :  { %v1810_v5 = vadd.f32 %v1809_v3, %v1808_v2  ;;  %v966_v2 = vld [vmem:[%s3346_s3 + $0x28] sm:$0xff] }
 0x599   :  { %v781_v7 = vadd.f32 %v1810_v5, %v247_v4  ;;  %v795_v17 = vadd.f32 %v1810_v5, %v2910_v16  ;;  %v984_v5 = vld [vmem:[%s3346_s3 + $0xb8] sm:$0xff] }
 0x59b   :  { %v1661_v9 = vmul.f32 -1.442695, %v781_v7 }
 0x59d   :  { %2304 = vpow2.f32 %v1661_v9  ;;  %v967_v9 = vld [vmem:[%s3346_s3 + $0x30] sm:$0xff] }
 0x5a7   :  { %v2305_v10 = vpop.eup %2304 }
 0x5a8   :  { %v785_v12 = vadd.f32 1.0, %v2305_v10  ;;  %v968_v10 = vld [vmem:[%s3346_s3 + $0x38] sm:$0xff] }
 0x5aa   :  { %2306 = vrcp.f32 %v785_v12  ;;  %v3120_v12 = vpack.c.bf16 %v968_v10, %v967_v9 }
 0x5b4   :  { %v2307_v14 = vpop.eup %2306 }
 0x5b5   :  { %789 = vrot.lane.b32.xlu0 %v2307_v14, %s2482_s21 }
 0x5b9   :  { %792 = vrot.lane.b32.xlu0 %v2307_v14, %s2481_s20 }
 0x5bd   :  { %948 = vperm.xlu0 %2284, %v1664_v11   ;;  %v985_v11 = vld [vmem:[%s3346_s3 + $0xc0] sm:$0xff] }
 0x627   :  { %v790_v47 = vpop.permute.xlu0 %789 }
 0x628   :  { %v796_v19 = vmul.f32 %v795_v17, %v790_v47  ;;  %v986_v17 = vld [vmem:[%s3346_s3 + $0xc8] sm:$0xff] }
 0x629   :  { %v3133_v47 = vpack.c.bf16 %v986_v17, %v985_v11 }
 0x62a   :  { %v797_v20 = vadd.f32 %v796_v19, %v247_v4  ;;  %v983_v4 = vld [vmem:[%s3346_s3 + $0xb0] sm:$0xff]  ;;  %v969_v19 = vld [vmem:[%s3346_s3 + $0x40] sm:$0xff] }
 0x62b   :  { %v793_v24 = vpop.permute.xlu0 %792  ;;  %v3112_v7 = vpack.c.bf16 %v984_v5, %v983_v4 }
 0x62c   :  { %2308 = vtanh.f32 %v797_v20  ;;  %v970_v20 = vld [vmem:[%s3346_s3 + $0x48] sm:$0xff] }
 0x636   :  { %v2309_v22 = vpop.eup %2308 }
 0x637   :  { %v800_v23 = vsub.f32 %v799_v63, %v2309_v22 }
 0x639   :  { %v801_v25 = vmul.f32 %v800_v23, %v793_v24  ;;  %v987_v23 = vld [vmem:[%s3346_s3 + $0xd0] sm:$0xff]  ;;  %v988_v24 = vld [vmem:[%s3346_s3 + $0xd8] sm:$0xff] }
 0x63b   :  { %v3028_v28 = vadd.f32 %v2309_v22, %v801_v25  ;;  %v3141_v22 = vpack.c.bf16 %v970_v20, %v969_v19  ;;  %v3154_v25 = vpack.c.bf16 %v988_v24, %v987_v23 }
 0x63c   :  { %v949_v10 = vpop.permute.xlu0 %948 }
 0x63d   :  { %v813_v32 = vsub.f32 %v3028_v28, %v799_v63  ;;  %v810_v4 = vmul.f32 %v3031_v37, %v3028_v28 }
 0x63f   :  { %v814_v41 = vmul.f32 %v813_v32, %v3031_v37  ;;  %v971_v32 = vld [vmem:[%s3346_s3 + $0x50] sm:$0xff] }
 0x641   :  { %v815_v42 = vadd.f32 %v814_v41, %v799_v63  ;;  %v965_v63 = vld [vmem:[%s3346_s3 + $0x20] sm:$0xff]  ;;  %v972_v41 = vld [vmem:[%s3346_s3 + $0x58] sm:$0xff] }
 0x642   :  { %v3100_v3 = vpack.c.bf16 %v966_v2, %v965_v63 }
 0x643   :  { %v816_v46 = vmul.f32 %v2916_v27, %v815_v42  ;;  %v817_v8 = vmul.f32 %v815_v42, %v2919_v33  ;;  %v1666_v42 = vld [vmem:[%s3344_s1 + $0x28] sm:$0xff] }
 0x644   :  { %2154 = vmatpush3.bf16.msra.mxu0 %v3100_v3 }
 0x645   :  { %916 = vmatprep.mubr.f32.mxu1 %v817_v8  ;;  %v3036_v13 = vadd.f32 %v817_v8, %v816_v46  ;;  %2156 = vmatprep.subr.bf16.mxu0 %v3112_v7  ;;  %v989_v8 = vld [vmem:[%s3346_s3 + $0xe0] sm:$0xff] }
 0x646   :  { %917 = vmatmul.mubr.f32.vlgmr.msra.gmra.mrb[4].mxu1 %v816_v46  ;;  %v3165_v46 = vpack.c.bf16 %v972_v41, %v971_v32  ;;  %v2167_v26 = vpack.c.bf16 %v990_v18, %v989_v8  ;;  %v669_v8 = vmul.f32 %v3015_v54, %v3012_v50 }
 0x647   :  { %2178 = vmatpush3.bf16.msra.mxu1 %v3052_v52 }
 0x648   :  { %2180 = vmatprep.subr.bf16.mxu1 %v3072_v49  ;;  %2158 = vmatpush3.bf16.msra.mxu0 %v3120_v12 }
 0x649   :  { %2160 = vmatprep.subr.bf16.mxu0 %v3133_v47 }
 0x64b   :  { %2182 = vmatpush3.bf16.msra.mxu1 %v3080_v56 }
 0x64c   :  { %2184 = vmatprep.subr.bf16.mxu1 %v3092_v61  ;;  %2162 = vmatpush3.bf16.msra.mxu0 %v3141_v22 }
 0x64d   :  { %2164 = vmatprep.subr.bf16.mxu0 %v3154_v25 }
 0x64f   :  { %2186 = vmatpush3.bf16.msra.mxu1 %v3100_v3 }
 0x650   :  { %2188 = vmatprep.subr.bf16.mxu1 %v3112_v7  ;;  %2166 = vmatpush3.bf16.msra.mxu0 %v3165_v46 }
 0x651   :  { %2168 = vmatprep.subr.bf16.mxu0 %v2167_v26 }
 0x653   :  { %2190 = vmatpush3.bf16.msra.mxu1 %v3120_v12 }
 0x654   :  { %2192 = vmatprep.subr.bf16.mxu1 %v3133_v47 }
 0x657   :  { %2194 = vmatpush3.bf16.msra.mxu1 %v3141_v22 }
 0x658   :  { %2196 = vmatprep.subr.bf16.mxu1 %v3154_v25 }
 0x65b   :  { %2198 = vmatpush3.bf16.msra.mxu1 %v3165_v46 }
 0x65c   :  { %2200 = vmatprep.subr.bf16.mxu1 %v2167_v26 }
 0x719   :  { %v1843_v57 = vpop.f32.mrb[4].mxu1 }
 0x71a   :  { %v1844_v1 = vpop.f32.mrb[5].mxu1 }
 0x71b   :  { %v3062_v15 = vadd.f32 %v1844_v1, %v1843_v57  ;;  %v2169_v57 = vpack.c.bf16 %v974_v44, %v973_v31  ;;  %v991_v1 = vld [vmem:[%s3346_s3 + $0xf0] sm:$0xff]  ;;  %v1424_v44 = vrot.slane %v669_v8, 4 }
 0x71d   :  { %v922_v21 = vadd.f32 %v3062_v15, %v3060_v6  ;;  %2170 = vmatpush3.bf16.msra.mxu0 %v2169_v57  ;;  %2202 = vmatpush3.bf16.msra.mxu1 %v2169_v57  ;;  %v936_v43 = vadd.f32 %v3062_v15, %v2910_v16 }
 0x71f   :  { %v1663_v29 = vmul.f32 -1.442695, %v922_v21  ;;  %v992_v21 = vld [vmem:[%s3346_s3 + $0xf8] sm:$0xff] }
 0x721   :  { %2310 = vpow2.f32 %v1663_v29  ;;  %v2171_v29 = vpack.c.bf16 %v992_v21, %v991_v1 }
 0x723   :  { %2172 = vmatprep.subr.bf16.mxu0 %v2171_v29  ;;  %2204 = vmatprep.subr.bf16.mxu1 %v2171_v29 }
 0x72b   :  { %v2311_v34 = vpop.eup %2310 }
 0x72c   :  { %v926_v38 = vadd.f32 1.0, %v2311_v34  ;;  %v975_v34 = vld [vmem:[%s3346_s3 + $0x70] sm:$0xff] }
 0x72e   :  { %2312 = vrcp.f32 %v926_v38  ;;  %v976_v38 = vld [vmem:[%s3346_s3 + $0x78] sm:$0xff] }
 0x72f   :  { %v2173_v40 = vpack.c.bf16 %v976_v38, %v975_v34 }
 0x731   :  { %2174 = vmatpush3.bf16.msra.mxu0 %v2173_v40  ;;  %2206 = vmatpush3.bf16.msra.mxu1 %v2173_v40 }
 0x732   :  { %2208 = vmatprep.subr.bf16.mxu0 %v3047_v39 }
 0x738   :  { %v2313_v14 = vpop.eup %2312 }
 0x739   :  { %930 = vrot.lane.b32.xlu1 %v2313_v14, %s2482_s21 }
 0x73d   :  { %933 = vrot.lane.b32.xlu1 %v2313_v14, %s2481_s20  ;;  %v1416_v14 = vrot.slane %v810_v4, 4 }
 0x741   :  { %1089 = vperm.xlu1 %2285, %v1666_v42  }
 0x7ab   :  { %v931_v51 = vpop.permute.xlu1 %930 }
 0x7ac   :  { %v937_v53 = vmul.f32 %v936_v43, %v931_v51 }
 0x7ae   :  { %v938_v58 = vadd.f32 %v937_v53, %v3060_v6 }
 0x7af   :  { %v934_v2 = vpop.permute.xlu1 %933 }
 0x7b0   :  { %2314 = vtanh.f32 %v938_v58  ;;  %v250_v58 = vadd.f32 %v2962_v59, %v2867_v48 }
 0x7ba   :  { %v2315_v60 = vpop.eup %2314 }
 0x7bb   :  { %v941_v63 = vsub.f32 %v3036_v13, %v2315_v60 }
 0x7bd   :  { %v942_v5 = vmul.f32 %v941_v63, %v934_v2 }
 0x7bf   :  { %v943_v9 = vadd.f32 %v2315_v60, %v942_v5 }
 0x7c0   :  { %v1090_v31 = vpop.permute.xlu1 %1089 }
 0x7c1   :  { %v951_v39 = vmul.f32 %v949_v10, %v943_v9  ;;  %v954_v11 = vsub.f32 %v943_v9, %v3036_v13 }
 0x7c3   :  { %v955_v15 = vmul.f32 %v954_v11, %v949_v10  ;;  %v1408_v17 = vrot.slane %v951_v39, 4  ;;  %v1418_v19 = vadd.f32 %v1416_v14, %v951_v39 }
 0x7c5   :  { %v1410_v20 = vadd.f32 %v1408_v17, %v810_v4  ;;  %1420 = vst [vmem:[#allocation7 + $0x10] sm:$0xf] %v1418_v19  ;;  %v956_v6 = vadd.f32 %v955_v15, %v3036_v13  ;;  %v528_v19 = vmul.f32 %v2983_v36, %v2979_v30  ;;  %v1449_v30 = vld [vmem:[#allocation4 + $0x8] sm:$0xff]  ;;  %v1451_v36 = vld [vmem:[#allocation4 + $0x18] sm:$0xff] }
 0x7c7   :  { %1412 = vst [vmem:[#allocation7 + $0xc] sm:$0xf] %v1410_v20  ;;  %v957_v23 = vmul.f32 %v2916_v27, %v956_v6  ;;  %v958_v24 = vmul.f32 %v956_v6, %v2919_v33 }
 0x7c9   :  { %1057 = vmatprep.mubr.f32.mxu0 %v958_v24  ;;  %v1081_v28 = vadd.f32 %v958_v24, %v957_v23  ;;  %v1432_v24 = vrot.slane %v528_v19, 4 }
 0x7ca   :  { %1058 = vmatmul.mubr.f32.vlgmr.msra.gmra.mrb[20].mxu0 %v957_v23 }
 0x7cb   :  { %2210 = vmatpush3.bf16.msra.mxu0 %v3052_v52  ;;  %v249_v52 = vadd.f32 %v2958_v55, %v2867_v48 }
 0x7cc   :  { %2212 = vmatprep.subr.bf16.mxu0 %v3072_v49 }
 0x7cf   :  { %2214 = vmatpush3.bf16.msra.mxu0 %v3080_v56 }
 0x7d0   :  { %2216 = vmatprep.subr.bf16.mxu0 %v3092_v61 }
 0x7d3   :  { %2218 = vmatpush3.bf16.msra.mxu0 %v3100_v3 }
 0x7d4   :  { %2220 = vmatprep.subr.bf16.mxu0 %v3112_v7 }
 0x7d7   :  { %2222 = vmatpush3.bf16.msra.mxu0 %v3120_v12 }
 0x7d8   :  { %2224 = vmatprep.subr.bf16.mxu0 %v3133_v47  ;;  %v1668_v47 = vld [vmem:[%s3344_s1 + $0x30] sm:$0xff] }
 0x7db   :  { %2226 = vmatpush3.bf16.msra.mxu0 %v3141_v22 }
 0x7dc   :  { %2228 = vmatprep.subr.bf16.mxu0 %v3154_v25 }
 0x7df   :  { %2230 = vmatpush3.bf16.msra.mxu0 %v3165_v46 }
 0x7e0   :  { %2232 = vmatprep.subr.bf16.mxu0 %v2167_v26 }
 0x7e3   :  { %2234 = vmatpush3.bf16.msra.mxu0 %v2169_v57 }
 0x7e4   :  { %2236 = vmatprep.subr.bf16.mxu0 %v2171_v29 }
 0x7e7   :  { %2238 = vmatpush3.bf16.msra.mxu0 %v2173_v40 }
 0x89d   :  { %v1878_v37 = vpop.f32.mrb[20].mxu0 }
 0x89e   :  { %v1879_v13 = vpop.f32.mrb[21].mxu0 }
 0x89f   :  { %v1880_v49 = vadd.f32 %v1879_v13, %v1878_v37 }
 0x8a1   :  { %v1063_v56 = vadd.f32 %v1880_v49, %v249_v52  ;;  %v1077_v22 = vadd.f32 %v1880_v49, %v2910_v16 }
 0x8a3   :  { %v1665_v61 = vmul.f32 -1.442695, %v1063_v56 }
 0x8a5   :  { %2316 = vpow2.f32 %v1665_v61 }
 0x8af   :  { %v2317_v3 = vpop.eup %2316 }
 0x8b0   :  { %v1067_v7 = vadd.f32 1.0, %v2317_v3 }
 0x8b2   :  { %2318 = vrcp.f32 %v1067_v7 }
 0x8bc   :  { %v2319_v12 = vpop.eup %2318 }
 0x8bd   :  { %1071 = vrot.lane.b32.xlu0 %v2319_v12, %s2482_s21 }
 0x8c1   :  { %1074 = vrot.lane.b32.xlu0 %v2319_v12, %s2481_s20 }
 0x8c5   :  { %1230 = vperm.xlu0 %2284, %v1668_v47   ;;  %v1448_v47 = vld [vmem:[#allocation4] sm:$0xff] }
 0x92f   :  { %v1072_v55 = vpop.permute.xlu0 %1071 }
 0x930   :  { %v1078_v25 = vmul.f32 %v1077_v22, %v1072_v55  ;;  %v2239_v22 = vpack.c.bf16 %v1451_v36, %v1449_v30  ;;  %v1450_v55 = vld [vmem:[#allocation4 + $0x10] sm:$0xff] }
 0x932   :  { %v1079_v32 = vadd.f32 %v1078_v25, %v249_v52  ;;  %v2241_v25 = vpack.c.bf16 %v1450_v55, %v1448_v47  ;;  %2240 = vmatprep.subr.bf16.mxu1 %v2239_v22 }
 0x933   :  { %v1075_v46 = vpop.permute.xlu0 %1074 }
 0x934   :  { %2320 = vtanh.f32 %v1079_v32 }
 0x93e   :  { %v2321_v41 = vpop.eup %2320 }
 0x93f   :  { %v1082_v42 = vsub.f32 %v1081_v28, %v2321_v41 }
 0x941   :  { %v1083_v18 = vmul.f32 %v1082_v42, %v1075_v46  ;;  %v3246_v42 = vadd.f32 %v2966_v62, %v2867_v48  ;;  %v1457_v48 = vld [vmem:[#allocation4 + $0x48] sm:$0xff]  ;;  %v1459_v62 = vld [vmem:[#allocation4 + $0x58] sm:$0xff] }
 0x943   :  { %v1084_v26 = vadd.f32 %v2321_v41, %v1083_v18 }
 0x944   :  { %v1231_v23 = vpop.permute.xlu0 %1230 }
 0x945   :  { %v1092_v57 = vmul.f32 %v1090_v31, %v1084_v26  ;;  %v1095_v1 = vsub.f32 %v1084_v26, %v1081_v28 }
 0x947   :  { %v1096_v21 = vmul.f32 %v1095_v1, %v1090_v31  ;;  %v1400_v29 = vrot.slane %v1092_v57, 4  ;;  %v1426_v34 = vadd.f32 %v1424_v44, %v1092_v57  ;;  %v1453_v31 = vld [vmem:[#allocation4 + $0x28] sm:$0xff]  ;;  %v1455_v44 = vld [vmem:[#allocation4 + $0x38] sm:$0xff] }
 0x948   :  { %v2243_v1 = vpack.c.bf16 %v1455_v44, %v1453_v31 }
 0x949   :  { %v1402_v38 = vadd.f32 %v1400_v29, %v669_v8  ;;  %1428 = vst [vmem:[#allocation7 + $0x14] sm:$0xf] %v1426_v34  ;;  %v1097_v40 = vadd.f32 %v1096_v21, %v1081_v28  ;;  %v1452_v21 = vld [vmem:[#allocation4 + $0x20] sm:$0xff]  ;;  %v1454_v29 = vld [vmem:[#allocation4 + $0x30] sm:$0xff] }
 0x94a   :  { %v2245_v34 = vpack.c.bf16 %v1454_v29, %v1452_v21 }
 0x94b   :  { %1404 = vst [vmem:[#allocation7 + $0x8] sm:$0xf] %v1402_v38  ;;  %v1098_v43 = vmul.f32 %v2916_v27, %v1097_v40  ;;  %v1099_v51 = vmul.f32 %v1097_v40, %v2919_v33  ;;  %v2247_v38 = vpack.c.bf16 %v1459_v62, %v1457_v48  ;;  %v1456_v40 = vld [vmem:[#allocation4 + $0x40] sm:$0xff] }
 0x94d   :  { %1198 = vmatprep.mubr.f32.mxu1 %v1099_v51  ;;  %v1222_v53 = vadd.f32 %v1099_v51, %v1098_v43 }
 0x94e   :  { %1199 = vmatmul.mubr.f32.vlgmr.msra.gmra.mrb[6].mxu1 %v1098_v43  ;;  %v1458_v43 = vld [vmem:[#allocation4 + $0x50] sm:$0xff] }
 0x94f   :  { %1556 = vmatprep.mubr.f32.mxu1 %v2479_v0  ;;  %v1670_v0 = vld [vmem:[%s3344_s1 + $0x38] sm:$0xff]  ;;  %2242 = vmatpush1.bf16.msra.mxu1 %v2241_v25  ;;  %v2249_v51 = vpack.c.bf16 %v1458_v43, %v1456_v40  ;;  %s2483_s1 = smov [#allocation8]  }
 0x950   :  { %2244 = vmatprep.subr.bf16.mxu1 %v2243_v1 }
 0x953   :  { %2246 = vmatpush1.bf16.msra.mxu1 %v2245_v34 }
 0x954   :  { %2248 = vmatprep.subr.bf16.mxu1 %v2247_v38 }
 0x957   :  { %2250 = vmatpush1.bf16.msra.mxu1 %v2249_v51 }
 0xa21   :  { %v1913_v50 = vpop.f32.mrb[6].mxu1 }
 0xa22   :  { %v1914_v54 = vpop.f32.mrb[7].mxu1 }
 0xa23   :  { %v1915_v60 = vadd.f32 %v1914_v54, %v1913_v50  ;;  %v1463_v50 = vld [vmem:[#allocation4 + $0x78] sm:$0xff] }
 0xa25   :  { %v1204_v63 = vadd.f32 %v1915_v60, %v250_v58  ;;  %v1218_v10 = vadd.f32 %v1915_v60, %v2910_v16  ;;  %v1462_v60 = vld [vmem:[#allocation4 + $0x70] sm:$0xff] }
 0xa27   :  { %v1667_v2 = vmul.f32 -1.442695, %v1204_v63 }
 0xa29   :  { %2322 = vpow2.f32 %v1667_v2  ;;  %v1465_v2 = vld [vmem:[#allocation4 + $0x88] sm:$0xff] }
 0xa33   :  { %v2323_v4 = vpop.eup %2322 }
 0xa34   :  { %v1208_v5 = vadd.f32 1.0, %v2323_v4  ;;  %v1467_v4 = vld [vmem:[#allocation4 + $0x98] sm:$0xff] }
 0xa36   :  { %2324 = vrcp.f32 %v1208_v5 }
 0xa40   :  { %v2325_v9 = vpop.eup %2324 }
 0xa41   :  { %1212 = vrot.lane.b32.xlu1 %v2325_v9, %s2482_s21 }
 0xa45   :  { %1215 = vrot.lane.b32.xlu1 %v2325_v9, %s2481_s20  ;;  %v2255_v9 = vpack.c.bf16 %v1467_v4, %v1465_v2 }
 0xa49   :  { %1371 = vperm.xlu1 %2285, %v1670_v0   ;;  %v1464_v0 = vld [vmem:[#allocation4 + $0x80] sm:$0xff] }
 0xab3   :  { %v1213_v59 = vpop.permute.xlu1 %1212 }
 0xab4   :  { %v1219_v14 = vmul.f32 %v1218_v10, %v1213_v59  ;;  %v1466_v10 = vld [vmem:[#allocation4 + $0x90] sm:$0xff] }
 0xab5   :  { %v2257_v59 = vpack.c.bf16 %v1466_v10, %v1464_v0 }
 0xab6   :  { %v1220_v39 = vadd.f32 %v1219_v14, %v250_v58  ;;  %v1460_v58 = vld [vmem:[#allocation4 + $0x60] sm:$0xff]  ;;  %v1469_v14 = vld [vmem:[#allocation4 + $0xa8] sm:$0xff] }
 0xab7   :  { %v1216_v17 = vpop.permute.xlu1 %1215  ;;  %v2253_v63 = vpack.c.bf16 %v1462_v60, %v1460_v58 }
 0xab8   :  { %2326 = vtanh.f32 %v1220_v39  ;;  %v1471_v39 = vld [vmem:[#allocation4 + $0xb8] sm:$0xff] }
 0xac2   :  { %v2327_v11 = vpop.eup %2326 }
 0xac3   :  { %v1223_v15 = vsub.f32 %v1222_v53, %v2327_v11 }
 0xac5   :  { %v1224_v20 = vmul.f32 %v1223_v15, %v1216_v17  ;;  %v1468_v15 = vld [vmem:[#allocation4 + $0xa0] sm:$0xff]  ;;  %v1470_v17 = vld [vmem:[#allocation4 + $0xb0] sm:$0xff] }
 0xac7   :  { %v1225_v6 = vadd.f32 %v2327_v11, %v1224_v20  ;;  %v2259_v11 = vpack.c.bf16 %v1471_v39, %v1469_v14  ;;  %v1473_v20 = vld [vmem:[#allocation4 + $0xc8] sm:$0xff] }
 0xac9   :  { %v1233_v28 = vmul.f32 %v1231_v23, %v1225_v6  ;;  %v1236_v37 = vsub.f32 %v1225_v6, %v1222_v53  ;;  %v1475_v6 = vld [vmem:[#allocation4 + $0xd8] sm:$0xff] }
 0xacb   :  { %v1237_v13 = vmul.f32 %v1236_v37, %v1231_v23  ;;  %v1392_v52 = vrot.slane %v1233_v28, 4  ;;  %v1434_v49 = vadd.f32 %v1432_v24, %v1233_v28  ;;  %v2263_v23 = vpack.c.bf16 %v1475_v6, %v1473_v20  ;;  %v1472_v24 = vld [vmem:[#allocation4 + $0xc0] sm:$0xff]  ;;  %v1474_v28 = vld [vmem:[#allocation4 + $0xd0] sm:$0xff] }
 0xacc   :  { %v2265_v37 = vpack.c.bf16 %v1474_v28, %v1472_v24 }
 0xacd   :  { %v1394_v56 = vadd.f32 %v1392_v52, %v528_v19  ;;  %1436 = vst [vmem:[#allocation7 + $0x18] sm:$0xf] %v1434_v49  ;;  %v1238_v61 = vadd.f32 %v1237_v13, %v1222_v53  ;;  %v1461_v53 = vld [vmem:[#allocation4 + $0x68] sm:$0xff]  ;;  %v2261_v19 = vpack.c.bf16 %v1470_v17, %v1468_v15  ;;  %v1479_v52 = vld [vmem:[#allocation4 + $0xf8] sm:$0xff] }
 0xace   :  { %v2251_v54 = vpack.c.bf16 %v1463_v50, %v1461_v53  ;;  %v1477_v13 = vld [vmem:[#allocation4 + $0xe8] sm:$0xff] }
 0xacf   :  { %1396 = vst [vmem:[#allocation7 + $0x4] sm:$0xf] %v1394_v56  ;;  %v1239_v3 = vmul.f32 %v2916_v27, %v1238_v61  ;;  %v1240_v7 = vmul.f32 %v1238_v61, %v2919_v33  ;;  %v2267_v49 = vpack.c.bf16 %v1479_v52, %v1477_v13  ;;  %v1476_v56 = vld [vmem:[#allocation4 + $0xe0] sm:$0xff]  ;;  %v1478_v61 = vld [vmem:[#allocation4 + $0xf0] sm:$0xff] }
 0xad0   :  { %2252 = vmatprep.subr.bf16.mxu1 %v2251_v54 }
 0xad1   :  { %1339 = vmatprep.mubr.f32.mxu0 %v1240_v7  ;;  %v3242_v12 = vadd.f32 %v1240_v7, %v1239_v3  ;;  %2254 = vmatpush1.bf16.msra.mxu1 %v2253_v63 }
 0xad2   :  { %1340 = vmatmul.mubr.f32.vlgmr.msra.gmra.mrb[22].mxu0 %v1239_v3  ;;  %2256 = vmatprep.subr.bf16.mxu1 %v2255_v9  ;;  %v2269_v3 = vpack.c.bf16 %v1478_v61, %v1476_v56 }
 0xad5   :  { %2258 = vmatpush1.bf16.msra.mxu1 %v2257_v59 }
 0xad6   :  { %2260 = vmatprep.subr.bf16.mxu1 %v2259_v11 }
 0xad9   :  { %2262 = vmatpush1.bf16.msra.mxu1 %v2261_v19 }
 0xada   :  { %2264 = vmatprep.subr.bf16.mxu1 %v2263_v23 }
 0xadd   :  { %2266 = vmatpush1.bf16.msra.mxu1 %v2265_v37 }
 0xade   :  { %2268 = vmatprep.subr.bf16.mxu1 %v2267_v49 }
 0xae1   :  { %2270 = vmatpush1.bf16.msra.mxu1 %v2269_v3 }
 0xba5   :  { %v1948_v32 = vpop.f32.mrb[22].mxu0 }
 0xba6   :  { %v1949_v41 = vpop.f32.mrb[23].mxu0 }
 0xba7   :  { %v3248_v46 = vadd.f32 %v1949_v41, %v1948_v32 }
 0xba9   :  { %v1345_v8 = vadd.f32 %v3248_v46, %v3246_v42  ;;  %v1359_v7 = vadd.f32 %v3248_v46, %v2910_v16 }
 0xbab   :  { %v1669_v18 = vmul.f32 -1.442695, %v1345_v8  ;;  %v1372_v8 = vpop.permute.xlu1 %1371 }
 0xbad   :  { %2328 = vpow2.f32 %v1669_v18  ;;  %v1440_v18 = vrot.slane %v2921_v35, 4 }
 0xbb7   :  { %v2329_v26 = vpop.eup %2328 }
 0xbb8   :  { %v1349_v57 = vadd.f32 1.0, %v2329_v26 }
 0xbba   :  { %2330 = vrcp.f32 %v1349_v57 }
 0xbc4   :  { %v2331_v5 = vpop.eup %2330 }
 0xbc5   :  { %1353 = vrot.lane.b32.xlu0 %v2331_v5, %s2482_s21  ;;  %s1595_s21 = sshll.u32 %s2483_s1, 4  ;;  %s1596_s21 = int_to_ptr.vmem [resolvable:$true] %s1595_s21 }
 0xbc6   :  { %s2358_s6 = scalar_lea.vmem %s1596_s21, 128  ;;  %p2363_p9 = scmp.lt.s32.totalorder %s1596_s21, %s1596_s21 }
 0xbc7   :  { %p2359_p8 = scmp.ne.s32.totalorder %s1596_s21, %s2358_s6  ;;  %p2364_p10 = scmp.lt.s32.totalorder %s2358_s6, %s2358_s6 }
 0xbc9   :  { %1356 = vrot.lane.b32.xlu0 %v2331_v5, %s2481_s20  ;;  %p2365_p11 = por %p2364_p10, %p2363_p9 }
 0xbcb   :  { %p2366_p12 = pnand %p2365_p11, %p2359_p8 }
 0xc37   :  { %v1354_v30 = vpop.permute.xlu0 %1353 }
 0xc38   :  { %v1360_v36 = vmul.f32 %v1359_v7, %v1354_v30 }
 0xc3a   :  { %v1361_v47 = vadd.f32 %v1360_v36, %v3246_v42 }
 0xc3b   :  { %v1357_v25 = vpop.permute.xlu0 %1356 }
 0xc3c   :  { %2332 = vtanh.f32 %v1361_v47 }
 0xc46   :  { %v2333_v22 = vpop.eup %2332 }
 0xc47   :  { %v1364_v55 = vsub.f32 %v3242_v12, %v2333_v22 }
 0xc49   :  { %v1365_v32 = vmul.f32 %v1364_v55, %v1357_v25 }
 0xc4b   :  { %v1366_v41 = vadd.f32 %v2333_v22, %v1365_v32 }
 0xc4d   :  { %v1374_v26 = vmul.f32 %v1372_v8, %v1366_v41  ;;  %v1377_v31 = vsub.f32 %v1366_v41, %v3242_v12 }
 0xc4f   :  { %v1378_v44 = vmul.f32 %v1377_v31, %v1372_v8  ;;  %v1385_v57 = vrot.slane %v1374_v26, 4  ;;  %v1442_v16 = vadd.f32 %v1440_v18, %v1374_v26 }
 0xc51   :  { %v1379_v46 = vadd.f32 %v1378_v44, %v3242_v12  ;;  %v1387_v42 = vadd.f32 %v1385_v57, %v2921_v35  ;;  %1444 = vst [vmem:[#allocation7 + $0x1c] sm:$0xf] %v1442_v16 }
 0xc53   :  { %1388 = vst [vmem:[#allocation7] sm:$0xf] %v1387_v42  ;;  %v1380_v1 = vmul.f32 %v2916_v27, %v1379_v46  ;;  %v1381_v21 = vmul.f32 %v1379_v46, %v2919_v33 }
 0xc55   :  { %1557 = vmatmul.mubr.f32.vlgmr.msra.gmra.mrb[8].mxu1 %v1380_v1  ;;  %1445 = vst [vmem:[#allocation8] sm:$0xf] %v1380_v1  ;;  %1447 = vst [vmem:[#allocation8] sm:$0xf0] %v1381_v21 }
 0xc56   :  { %2369 = shalt.err (!%p2366_p12)
}
 0xc57   :  { %s2370_s0 = scalar_lea.hbm %s3353_s10, 128 }
 0xc58   :  { %p2371_p13 = scmp.ne.s32.totalorder %s3353_s10, %s2370_s0  ;;  %p2374_p0 = scmp.lt.u32.totalorder %s2370_s0, %s3353_s10 }
 0xc5a   :  { %p2376_p1 = pnand %p2374_p0, %p2371_p13 }
 0xc5c   :  { %2379 = shalt.err (!%p2376_p1)
}
 0xc5d   :  { %s2484_s15 = smov 4   ;;  %s2485_s18 = smov [#allocation7]  }
 0xc5e   :  { %1601 = dma.vmem_to_hbm [thread:$0]  %s1596_s21, 128, %s3353_s10, [#allocation9], %s2481_s20, %s2481_s20, %s2484_s15  }
 0xc5f   :  { %s1583_s19 = sshll.u32 %s2485_s18, 4  ;;  %s1584_s19 = int_to_ptr.vmem [resolvable:$true] %s1583_s19 }
 0xc60   :  { %s2380_s22 = scalar_lea.vmem %s1584_s19, 512  ;;  %p2385_p3 = scmp.lt.s32.totalorder %s1584_s19, %s1584_s19 }
 0xc61   :  { %p2381_p2 = scmp.ne.s32.totalorder %s1584_s19, %s2380_s22  ;;  %p2386_p4 = scmp.lt.s32.totalorder %s2380_s22, %s2380_s22 }
 0xc63   :  { %p2387_p5 = por %p2386_p4, %p2385_p3 }
 0xc65   :  { %p2388_p6 = pnand %p2387_p5, %p2381_p2 }
 0xc67   :  { %2391 = shalt.err (!%p2388_p6)
}
 0xc68   :  { %s2392_s24 = scalar_lea.hbm %s3352_s9, 512 }
 0xc69   :  { %p2393_p7 = scmp.ne.s32.totalorder %s3352_s9, %s2392_s24  ;;  %p2396_p8 = scmp.lt.u32.totalorder %s2392_s24, %s3352_s9 }
 0xc6b   :  { %p2398_p9 = pnand %p2396_p8, %p2393_p7 }
 0xc6d   :  { %2401 = shalt.err (!%p2398_p9)
}
 0xc6e   :  { %1589 = dma.vmem_to_hbm [thread:$0]  %s1584_s19, 512, %s3352_s9, [#allocation6], %s2481_s20, %s2481_s20, %s2484_s15   ;;  %v1484_v27 = vsub.s32 0, %v2856_v45  ;;  %v1488_v35 = vsub.s32 1, %v2856_v45 }
 0xc6f   :  { %v1480_v33 = vld [vmem:[%s3350_s7] sm:$0x3]  ;;  %s2486_s26 = smov [#allocation11]   ;;  %s2487_s0 = smov [#allocation13]  }
 0xc70   :  { %v1485_v12 = vrot.slane %v1480_v33, %v1484_v27  ;;  %v1489_v29 = vrot.slane %v1480_v33, %v1488_v35  ;;  %s1618_s29 = sshll.u32 %s2486_s26, 4  ;;  %s1628_s5 = sshll.u32 %s2487_s0, 4  ;;  %s1619_s29 = int_to_ptr.vmem [resolvable:$true] %s1618_s29  ;;  %s3297_s5 = int_to_ptr.vmem [resolvable:$true] %s1628_s5 }
 0xc71   :  { %s2402_s7 = scalar_lea.vmem %s1619_s29, 64  ;;  %p2407_p11 = scmp.lt.s32.totalorder %s1619_s29, %s1619_s29 }
 0xc72   :  { %p2403_p10 = scmp.ne.s32.totalorder %s1619_s29, %s2402_s7  ;;  %p2408_p12 = scmp.lt.s32.totalorder %s2402_s7, %s2402_s7 }
 0xc74   :  { %p2409_p13 = por %p2408_p12, %p2407_p11 }
 0xc76   :  { %p2410_p0 = pnand %p2409_p13, %p2403_p10 }
 0xd28   :  { %v1558_v34 = vpop.f32.mrb[8].mxu1 }
 0xd29   :  { %v1559_v48 = vadd.f32 %v1558_v34, %v1485_v12  ;;  %v1560_v62 = vpop.f32.mrb[9].mxu1 }
 0xd2a   :  { %v1561_v38 = vadd.f32 %v1560_v62, %v1489_v29 }
 0xd2b   :  { %v1565_v40 = vmul.f32 0.01, %v1559_v48  ;;  %vm1563_vm1 = vcmp.ge.f32.partialorder %v1559_v48, 0.0 }
 0xd2c   :  { %vm1564_vm2 = vcmp.ge.f32.partialorder %v1561_v38, 0.0  ;;  %v1566_v43 = vmul.f32 0.01, %v1561_v38 }
 0xd2d   :  { %v1567_v51 = vsel %vm1563_vm1, %v1559_v48, %v1565_v40 }
 0xd2e   :  { %v1568_v53 = vsel %vm1564_vm2, %v1561_v38, %v1566_v43  ;;  %1569 = vst [vmem:[#allocation11] sm:$0xf] %v1567_v51 }
 0xd2f   :  { %v1572_v45 = vmul.f32 0.5, %v1568_v53  ;;  %1570 = vst [vmem:[#allocation13] sm:$0xf] %v1568_v53 }
 0xd30   :  { %2413 = shalt.err (!%p2410_p0)
}
 0xd31   :  { %s2414_s4 = scalar_lea.hbm %s3355_s12, 64 }
 0xd32   :  { %p2415_p1 = scmp.ne.s32.totalorder %s3355_s12, %s2414_s4  ;;  %p2418_p2 = scmp.lt.u32.totalorder %s2414_s4, %s3355_s12 }
 0xd34   :  { %p2420_p3 = pnand %p2418_p2, %p2415_p1 }
 0xd36   :  { %2423 = shalt.err (!%p2420_p3)
}
 0xd37   :  { %1621 = dma.vmem_to_hbm [thread:$0]  %s1619_s29, 64, %s3355_s12, [#allocation12]  }
 0xd38   :  { %s2424_s19 = scalar_lea.vmem %s3297_s5, 64  ;;  %p2429_p5 = scmp.lt.s32.totalorder %s3297_s5, %s3297_s5 }
 0xd39   :  { %p2425_p4 = scmp.ne.s32.totalorder %s3297_s5, %s2424_s19  ;;  %p2430_p6 = scmp.lt.s32.totalorder %s2424_s19, %s2424_s19 }
 0xd3b   :  { %p2431_p7 = por %p2430_p6, %p2429_p5 }
 0xd3d   :  { %p2432_p8 = pnand %p2431_p7, %p2425_p4 }
 0xd3f   :  { %2435 = shalt.err (!%p2432_p8)
}
 0xd40   :  { %s2436_s2 = scalar_lea.hbm %s3356_s13, 64 }
 0xd41   :  { %p2437_p9 = scmp.ne.s32.totalorder %s3356_s13, %s2436_s2  ;;  %p2440_p10 = scmp.lt.u32.totalorder %s2436_s2, %s3356_s13 }
 0xd43   :  { %p2442_p11 = pnand %p2440_p10, %p2437_p9 }
 0xd45   :  { %2445 = shalt.err (!%p2442_p11)
}
 0xd46   :  { %1631 = dma.vmem_to_hbm [thread:$0]  %s3297_s5, 64, %s3356_s13, [#allocation12]   ;;  %v1573_v50 = vmul.f32 1.442695, %v1572_v45  ;;  %v1571_v54 = vld [vmem:[%s3351_s8] sm:$0xf] }
 0xd47   :  { %s2488_s21 = smov [#allocation10]  }
 0xd48   :  { %2334 = vpow2.f32 %v1573_v50  ;;  %s1608_s6 = sshll.u32 %s2488_s21, 4  ;;  %s1609_s6 = int_to_ptr.vmem [resolvable:$true] %s1608_s6 }
 0xd49   :  { %s2446_s26 = scalar_lea.vmem %s1609_s6, 64  ;;  %p2451_p13 = scmp.lt.s32.totalorder %s1609_s6, %s1609_s6 }
 0xd4a   :  { %p2447_p12 = scmp.ne.s32.totalorder %s1609_s6, %s2446_s26  ;;  %p2452_p0 = scmp.lt.s32.totalorder %s2446_s26, %s2446_s26 }
 0xd4c   :  { %p2453_p1 = por %p2452_p0, %p2451_p13 }
 0xd4e   :  { %p2454_p2 = pnand %p2453_p1, %p2447_p12 }
 0xd52   :  { %v2335_v58 = vpop.eup %2334 }
 0xd53   :  { %v1575_v60 = vmul.f32 %v2335_v58, %v1571_v54 }
 0xd55   :  { %v1576_v63 = vadd.f32 %v1575_v60, %v1567_v51 }
 0xd57   :  { %1577 = vst [vmem:[#allocation10] sm:$0xf] %v1576_v63 }
 0xd58   :  { %2457 = shalt.err (!%p2454_p2)
}
 0xd59   :  { %s2458_s0 = scalar_lea.hbm %s3354_s11, 64 }
 0xd5a   :  { %p2459_p3 = scmp.ne.s32.totalorder %s3354_s11, %s2458_s0  ;;  %p2462_p4 = scmp.lt.u32.totalorder %s2458_s0, %s3354_s11 }
 0xd5c   :  { %p2464_p5 = pnand %p2462_p4, %p2459_p3 }
 0xd5e   :  { %2467 = shalt.err (!%p2464_p5)
}
 0xd5f   :  { %1611 = dma.vmem_to_hbm [thread:$0]  %s1609_s6, 64, %s3354_s11, [#allocation9]  }
 0xd60   :  { %2470 = dma.done.wait [#allocation6], 512  }
 0xd61   :  { %2471 = vsyncadd [#allocation6], 4294966784 }
 0xd62   :  { %2472 = dma.done.wait [#allocation9], 192  }
 0xd63   :  { %2473 = vsyncadd [#allocation9], 4294967104 }
 0xd64   :  { %2474 = dma.done.wait [#allocation12], 128  }
 0xd65   :  { %2475 = vsyncadd [#allocation12], 4294967168 }
 0xd66   :  { %1647 = vsyncpa [#allocation5], 1 }
 0xd67   :  { %1648 = vsyncpa [#allocation6], 1 }
 0xd68   :  { %1649 = vsyncpa [#allocation9], 1 }
 0xd69   :  { %1650 = vsyncpa [#allocation12], 1 }

</bundles_post_ra>
